<compile_context>
chip_gen: v7x
topology: tpu7x:2x2x1
jax: 0.10.0
libtpu: 0.0.40
codegen_flags: <defaults>
</compile_context>

<pallas_src>
import jax
import jax.numpy as jnp
from jax.experimental import pallas as pl
from jax.experimental.pallas import tpu as pltpu


# ---------------------------------------------------------------------------
# Kernel 1: fused QKV projection.
#   x tile (TM, E) @ [Wk|Wq|Wv] (E, 3*H*E) + bias  ->  k, q, v tiles (TM, H*E)
# ---------------------------------------------------------------------------
def _qkv_proj_kernel(x_ref, w_ref, b_ref, k_ref, q_ref, v_ref):
    HE = k_ref.shape[1]
    acc = jnp.dot(x_ref[...], w_ref[...], preferred_element_type=jnp.float32)
    acc = acc + b_ref[...].astype(jnp.float32)
    # Lane slices at multiples of 128 -> unmasked, lane-dense stores.
    k_ref[...] = acc[:, :HE].astype(k_ref.dtype)
    q_ref[...] = acc[:, HE:2 * HE].astype(q_ref.dtype)
    v_ref[...] = acc[:, 2 * HE:].astype(v_ref.dtype)


def _qkv_proj(x, w_cat, b_cat, HE, block_rows=512):
    M, K = x.shape
    _, N3 = w_cat.shape
    if M <= block_rows:
        TM = M                                   # full extent is always legal
    else:
        TM = max(8, (block_rows // 8) * 8)       # second-minor: multiple of 8
    grid = (pl.cdiv(M, TM),)
    out_sds = jax.ShapeDtypeStruct((M, HE), x.dtype)

    return pl.pallas_call(
        _qkv_proj_kernel,
        out_shape=(out_sds, out_sds, out_sds),
        grid_spec=pltpu.PrefetchScalarGridSpec(
            num_scalar_prefetch=0,
            grid=grid,
            in_specs=[
                pl.BlockSpec((TM, K), lambda i: (i, 0)),   # streamed row tiles
                pl.BlockSpec((K, N3), lambda i: (0, 0)),   # weights resident in VMEM
                pl.BlockSpec((1, N3), lambda i: (0, 0)),   # bias resident in VMEM
            ],
            out_specs=(pl.BlockSpec((TM, HE), lambda i: (i, 0)),) * 3,
        ),
        compiler_params=pltpu.CompilerParams(
            dimension_semantics=("parallel",)),            # megacore on v7x
    )(x, w_cat, b_cat)


# ---------------------------------------------------------------------------
# Kernel 2: attention core (diag(K Q^T), softmax over heads, scale V) fused
# with the output projection `ll`.  Writes (B, N, E_out) directly.
# ---------------------------------------------------------------------------
def _attn_out_kernel(k_ref, q_ref, v_ref, wo_ref, bo_ref, o_ref):
    # k/q/v_ref: (1, H, TN, E); wo_ref: (H*E, E_out); bo_ref: (1, E_out)
    # o_ref:     (1, TN, E_out)
    H = k_ref.shape[1]
    E = k_ref.shape[3]

    # d[h] = diag of K_h @ Q_h^T for this seq tile, shape (TN, 1)
    d = [jnp.sum(k_ref[0, h].astype(jnp.float32) * q_ref[0, h].astype(jnp.float32),
                 axis=-1, keepdims=True)
         for h in range(H)]

    # Softmax over the heads axis (== torch.softmax(energy, dim=1) restricted
    # to the diagonal entries the einsum actually reads).
    m = d[0]
    for h in range(1, H):
        m = jnp.maximum(m, d[h])
    p = [jnp.exp(dh - m) for dh in d]
    denom = p[0]
    for h in range(1, H):
        denom = denom + p[h]
    inv = 1.0 / denom           # exact divide keeps tight correctness tolerance

    # out = bias + sum_h (a_h * V_h) @ Wo[h*E:(h+1)*E, :]
    # This IS ll(permute(0,2,1,3)+rearrange(f)) with the layout shuffle folded
    # into the Wo row-block selection — f never hits HBM.
    acc = jnp.zeros(o_ref.shape[1:], jnp.float32)           # (TN, E_out)
    for h in range(H):
        fh = (p[h] * inv) * v_ref[0, h].astype(jnp.float32)  # (TN, E)
        acc = acc + jnp.dot(fh, wo_ref[h * E:(h + 1) * E, :].astype(jnp.float32),
                            preferred_element_type=jnp.float32)
    o_ref[0, :, :] = (acc + bo_ref[...].astype(jnp.float32)).astype(o_ref.dtype)


def _attn_out(k, q, v, wo_t, bo_row, block_seq=256):
    B, H, N, E = k.shape
    HE, E_out = wo_t.shape
    if N <= block_seq:
        TN = N
    else:
        TN = max(8, (block_seq // 8) * 8)
    grid = (B, pl.cdiv(N, TN))

    kqv_spec = pl.BlockSpec((1, H, TN, E), lambda b, j: (b, 0, j, 0))
    return pl.pallas_call(
        _attn_out_kernel,
        out_shape=jax.ShapeDtypeStruct((B, N, E_out), v.dtype),
        grid_spec=pltpu.PrefetchScalarGridSpec(
            num_scalar_prefetch=0,
            grid=grid,
            in_specs=[kqv_spec, kqv_spec, kqv_spec,
                      pl.BlockSpec((HE, E_out), lambda b, j: (0, 0)),  # Wo resident
                      pl.BlockSpec((1, E_out), lambda b, j: (0, 0))],  # bias resident
            out_specs=pl.BlockSpec((1, TN, E_out), lambda b, j: (b, j, 0)),
        ),
        compiler_params=pltpu.CompilerParams(
            dimension_semantics=("parallel", "parallel")),
    )(k, q, v, wo_t, bo_row)


# ---------------------------------------------------------------------------
# Full module forward.
# ---------------------------------------------------------------------------
def multi_head_attention(x, wk, bk, wq, bq, wv, bv, wo, bo, *,
                         num_heads=2, block_rows=512, block_seq=256):
    """x: (B, N, E); wk/wq/wv: (H*E, E); bk/bq/bv: (H*E,); wo: (E, H*E); bo: (E,)."""
    B, N, E = x.shape
    H = num_heads
    HE = H * E

    # Fused QKV projection: single streamed pass over x, three separate outputs.
    w_cat = jnp.concatenate([wk.T, wq.T, wv.T], axis=1)        # (E, 3*H*E)
    b_cat = jnp.concatenate([bk, bq, bv]).reshape(1, 3 * HE)   # (1, 3*H*E)
    k_flat, q_flat, v_flat = _qkv_proj(x.reshape(B * N, E), w_cat, b_cat, HE,
                                       block_rows)

    # torch .view(B, H, -1, E): raw row-major reinterpret of (B, N, H*E) ->
    # (B, H, N, E).  These reshapes are contiguous -> no HBM copies.
    k = k_flat.reshape(B, H, N, E)
    q = q_flat.reshape(B, H, N, E)
    v = v_flat.reshape(B, H, N, E)

    # Attention core + output projection fused into one kernel.
    out = _attn_out(k, q, v, wo.T, bo.reshape(1, E), block_seq)  # (B, N, E)
    return out


# ---------------------------------------------------------------------------
# Pure-JAX reference: literal translation of the PyTorch forward.
# ---------------------------------------------------------------------------
def mha_reference(x, wk, bk, wq, bq, wv, bv, wo, bo, num_heads=2):
    B, N, E = x.shape
    H = num_heads
    k = (x @ wk.T + bk).reshape(B, H, N, E)
    q = (x @ wq.T + bq).reshape(B, H, N, E)
    v = (x @ wv.T + bv).reshape(B, H, N, E)
    energy = jnp.einsum('bhie,bhje->bhij', k, q)        # matmul(K, Q.permute(0,1,3,2))
    energy = jax.nn.softmax(energy, axis=1)             # torch.softmax(energy, 1)
    diag = jnp.diagonal(energy, axis1=2, axis2=3)       # einsum('bnll,...') diagonal
    f = diag[..., None] * v                             # 'bnll,bnle->bnle'
    f = jnp.transpose(f, (0, 2, 1, 3)).reshape(B, N, H * E)
    return f @ wo.T + bo


if __name__ == "__main__":
    batch_size, seq_len = 2, 16
    embed_size, num_heads = 256, 2
    HE = embed_size * num_heads

    key = jax.random.PRNGKey(0)
    keys = jax.random.split(key, 9)
    x = jax.random.normal(keys[0], (batch_size, seq_len, embed_size), jnp.float32)
    wk = jax.random.normal(keys[1], (HE, embed_size), jnp.float32) * 0.02
    bk = jax.random.normal(keys[2], (HE,), jnp.float32) * 0.02
    wq = jax.random.normal(keys[3], (HE, embed_size), jnp.float32) * 0.02
    bq = jax.random.normal(keys[4], (HE,), jnp.float32) * 0.02
    wv = jax.random.normal(keys[5], (HE, embed_size), jnp.float32) * 0.02
    bv = jax.random.normal(keys[6], (HE,), jnp.float32) * 0.02
    wo = jax.random.normal(keys[7], (embed_size, HE), jnp.float32) * 0.02
    bo = jax.random.normal(keys[8], (embed_size,), jnp.float32) * 0.02

    # Small block sizes so this test exercises multi-tile grids / pipelining
    # (production defaults are block_rows=512, block_seq=256).
    out = multi_head_attention(x, wk, bk, wq, bq, wv, bv, wo, bo,
                               num_heads=num_heads, block_rows=8, block_seq=8)
    out = jax.block_until_ready(out)

    ref = mha_reference(x, wk, bk, wq, bq, wv, bv, wo, bo, num_heads=num_heads)

    assert out.shape == (batch_size, seq_len, embed_size)
    assert jnp.allclose(out, ref, atol=1e-4, rtol=1e-4)
    print("KERNEL_OK")
</pallas_src>

<mosaic_0001>
module attributes {stable_mosaic.version = 11 : i64} {
  func.func @_qkv_proj_kernel(%arg0: i32, %arg1: memref<8x256xf32, #tpu.memory_space<vmem>>, %arg2: memref<256x1536xf32, #tpu.memory_space<vmem>>, %arg3: memref<1x1536xf32, #tpu.memory_space<vmem>>, %arg4: memref<8x512xf32, #tpu.memory_space<vmem>>, %arg5: memref<8x512xf32, #tpu.memory_space<vmem>>, %arg6: memref<8x512xf32, #tpu.memory_space<vmem>>) attributes {dimension_semantics = [#tpu.dimension_semantics<parallel>], iteration_bounds = array<i64: 4>, scalar_prefetch = 0 : i64, scratch_operands = 0 : i64, tpu.core_type = #tpu.core_type<tc>, window_params = [{transform_indices = @transform_0, window_bounds = array<i64: 8, 256>}, {pipeline_mode = #tpu.pipeline_mode<synchronous>, transform_indices = @transform_1, window_bounds = array<i64: 256, 1536>}, {pipeline_mode = #tpu.pipeline_mode<synchronous>, transform_indices = @transform_2, window_bounds = array<i64: 1, 1536>}, {transform_indices = @transform_3, window_bounds = array<i64: 8, 512>}, {transform_indices = @transform_4, window_bounds = array<i64: 8, 512>}, {transform_indices = @transform_5, window_bounds = array<i64: 8, 512>}]} {
    %c0 = arith.constant 0 : index
    %c0_0 = arith.constant 0 : index
    %0 = vector.load %arg1[%c0, %c0_0] : memref<8x256xf32, #tpu.memory_space<vmem>>, vector<8x256xf32>
    %c0_1 = arith.constant 0 : index
    %c0_2 = arith.constant 0 : index
    %1 = vector.load %arg2[%c0_1, %c0_2] : memref<256x1536xf32, #tpu.memory_space<vmem>>, vector<256x1536xf32>
    %cst = arith.constant dense<0.000000e+00> : vector<8x1536xf32>
    %2 = tpu.matmul %0, %1, %cst {dimension_numbers = #tpu.dot_dimension_numbers<[1], [0], [0], [1], [0, 0, 1, 1], [], []>} : vector<8x256xf32>, vector<256x1536xf32>, vector<8x1536xf32> -> vector<8x1536xf32>
    %c0_3 = arith.constant 0 : index
    %c0_4 = arith.constant 0 : index
    %3 = vector.load %arg3[%c0_3, %c0_4] : memref<1x1536xf32, #tpu.memory_space<vmem>>, vector<1x1536xf32>
    %4 = vector.broadcast %3 : vector<1x1536xf32> to vector<8x1536xf32>
    %5 = arith.addf %2, %4 : vector<8x1536xf32>
    %6 = vector.extract_strided_slice %5 {offsets = [0, 0], sizes = [8, 512], strides = [1, 1]} : vector<8x1536xf32> to vector<8x512xf32>
    %c0_5 = arith.constant 0 : index
    %c0_6 = arith.constant 0 : index
    %7 = vector.load %arg4[%c0_5, %c0_6] : memref<8x512xf32, #tpu.memory_space<vmem>>, vector<8x512xf32>
    tpu.vector_store %arg4[%c0_5, %c0_6], %6 {strides = array<i32>} : memref<8x512xf32, #tpu.memory_space<vmem>>, vector<8x512xf32>,
    %8 = vector.extract_strided_slice %5 {offsets = [0, 512], sizes = [8, 512], strides = [1, 1]} : vector<8x1536xf32> to vector<8x512xf32>
    %c0_7 = arith.constant 0 : index
    %c0_8 = arith.constant 0 : index
    %9 = vector.load %arg5[%c0_7, %c0_8] : memref<8x512xf32, #tpu.memory_space<vmem>>, vector<8x512xf32>
    tpu.vector_store %arg5[%c0_7, %c0_8], %8 {strides = array<i32>} : memref<8x512xf32, #tpu.memory_space<vmem>>, vector<8x512xf32>,
    %10 = vector.extract_strided_slice %5 {offsets = [0, 1024], sizes = [8, 512], strides = [1, 1]} : vector<8x1536xf32> to vector<8x512xf32>
    %c0_9 = arith.constant 0 : index
    %c0_10 = arith.constant 0 : index
    %11 = vector.load %arg6[%c0_9, %c0_10] : memref<8x512xf32, #tpu.memory_space<vmem>>, vector<8x512xf32>
    tpu.vector_store %arg6[%c0_9, %c0_10], %10 {strides = array<i32>} : memref<8x512xf32, #tpu.memory_space<vmem>>, vector<8x512xf32>,
    return
  }
  func.func @transform_0(%arg0: i32) -> (i32, i32) {
    %c0_i32 = arith.constant 0 : i32
    %c0_i32_0 = arith.constant 0 : i32
    return %arg0, %c0_i32 : i32, i32
  }
  func.func @transform_1(%arg0: i32) -> (i32, i32) {
    %c0_i32 = arith.constant 0 : i32
    %c0_i32_0 = arith.constant 0 : i32
    %c0_i32_1 = arith.constant 0 : i32
    return %c0_i32, %c0_i32_0 : i32, i32
  }
  func.func @transform_2(%arg0: i32) -> (i32, i32) {
    %c0_i32 = arith.constant 0 : i32
    %c0_i32_0 = arith.constant 0 : i32
    %c0_i32_1 = arith.constant 0 : i32
    return %c0_i32, %c0_i32_0 : i32, i32
  }
  func.func @transform_3(%arg0: i32) -> (i32, i32) {
    %c0_i32 = arith.constant 0 : i32
    %c0_i32_0 = arith.constant 0 : i32
    return %arg0, %c0_i32 : i32, i32
  }
  func.func @transform_4(%arg0: i32) -> (i32, i32) {
    %c0_i32 = arith.constant 0 : i32
    %c0_i32_0 = arith.constant 0 : i32
    return %arg0, %c0_i32 : i32, i32
  }
  func.func @transform_5(%arg0: i32) -> (i32, i32) {
    %c0_i32 = arith.constant 0 : i32
    %c0_i32_0 = arith.constant 0 : i32
    return %arg0, %c0_i32 : i32, i32
  }
}

</mosaic_0001>

<bundles_post_ra>
// kernel: tpu_custom_call.1
= control target key start
LH: loop header
LB: loop body
LE: loop exit
PB: predicated region body
PF: predicated region fallthrough
CT: control target
= control target key end

     0   :  { %11 = vsyncpa [#allocation3], 0  ;;  %s2462_s0 = inlined_call_operand.hbm [shape: f32[32,256], index: 0, kind: input, shape index: {}]   ;;  %s2463_s1 = inlined_call_operand.hbm [shape: f32[256,1536], index: 1, kind: input, shape index: {}]   ;;  %s2464_s2 = inlined_call_operand.hbm [shape: f32[1,1536], index: 2, kind: input, shape index: {}]   ;;  %s2465_s3 = inlined_call_operand.hbm [shape: f32[32,512], index: 3, kind: output, shape index: {0}]   ;;  %s2466_s4 = inlined_call_operand.hbm [shape: f32[32,512], index: 4, kind: output, shape index: {1}]   ;;  %s2467_s5 = inlined_call_operand.hbm [shape: f32[32,512], index: 5, kind: output, shape index: {2}]  }
   0x1   :  { %13 = vsyncpa [#allocation3 + $0x1], 0 }
   0x2   :  { %14 = vsyncpa [#allocation6], 0 }
   0x3   :  { %15 = vsyncpa [#allocation4], 0 }
   0x4   :  { %17 = vsyncpa [#allocation4 + $0x1], 0 }
   0x5   :  { %18 = vsyncpa [#allocation10], 0 }
   0x6   :  { %20 = vsyncpa [#allocation10 + $0x1], 0  ;;  %s2126_s18 = smov 0   ;;  %s2128_s19 = smov 0  }
   0x7   :  { %s2130_s20 = smov 0   ;;  %s2132_s21 = smov 0  }
   0x8 LB: > { %s2147_s22 = sadd.s32 4294967295, %s2086_s21   ;;  %s1377_s23 = sadd.s32 4294967294, %s2086_s21   ;;  %s2086_s21 = sphi %s2132_s21, %s2486_s21   ;;  %s2082_s20 = sphi %s2130_s20, %s2485_s20   ;;  %s2078_s19 = sphi %s2128_s19, %s2484_s19   ;;  %s2074_s18 = sphi %s2126_s18, %s2483_s18  }
   0x9   : > { %p46_p0 = scmp.ne.s32.totalorder %s2078_s19, %s2074_s18  ;;  %p2468_p1 = scmp.eq.s32.totalorder %s2147_s22, 0 }
   0xa   : > { %p118_p3 = scmp.eq.s32.totalorder %s1377_s23, 3  ;;  %p1378_p5 = scmp.ge.s32.totalorder %s2086_s21, 1 }
   0xb   : > { %p2158_p4 = por %p2468_p1, %p46_p0  ;;  %p177_p7 = scmp.lt.s32.totalorder %s2086_s21, 5 }
   0xc   : > { %p2163_p6 = por %p118_p3, %p46_p0  ;;  %s2088_s27 = smov [#allocation5]  }
   0xd   : > { %s2471_s24 = scalar_select %p2158_p4, 1, 0 }
   0xe   : > { %s2472_s25 = scalar_select %p2163_p6, 1, 0 }
   0xf   : > { %p2168_p8 = pnand %p1378_p5, %p177_p7  ;;  %s189_s28 = sshll.u32 %s2088_s27, 4  ;;  %s190_s28 = int_to_ptr.vmem [resolvable:$true] %s189_s28 }
  0x10   : > { %s2089_s30 = smov [#allocation7]   ;;  %s1870_s9 = scalar_lea.hbm %s2463_s1, 49152 }
  0x11   : > { %s2473_s26 = scalar_select %p2168_p8, 1, 0 }
  0x12   : > { %p1807_p9 = pneg %p2168_p8  ;;  %s203_s6 = sshll.u32 %s2089_s30, 4  ;;  %s2180_s6 = int_to_ptr.vmem [resolvable:$true] %s203_s6 }
  0x13   : > { %p1871_p11 = scmp.ne.s32.totalorder %s2463_s1, %s1870_s9  ;;  %p1877_p3 = scmp.lt.u32.totalorder %s1870_s9, %s2463_s1 }
  0x14   : > { %p2176_p10 = pnand %p1807_p9, %p2468_p1 }
  0x16   : > { %p1872_p12 = pneg %p2176_p10 }
  0x18   : > { %p1873_p13 = pnand %p1872_p12, %p1871_p11 }
  0x1a   : > { %p1874_p0 = pneg %p1873_p13 }
  0x1c   : > { %p1879_p5 = pnand %p1877_p3, %p1874_p0 }
  0x1e   : > { %1882 = shalt.err (!%p1879_p5)
}
  0x1f   : > { %s1883_s14 = scalar_lea.vmem %s190_s28, 49152  ;;  %p1891_p2 = scmp.lt.s32.totalorder %s190_s28, %s190_s28 }
  0x20   : > { %p1884_p7 = scmp.ne.s32.totalorder %s190_s28, %s1883_s14  ;;  %p1892_p6 = scmp.lt.s32.totalorder %s1883_s14, %s1883_s14 }
  0x22   : > { %p1886_p9 = pnand %p1884_p7, %p1872_p12  ;;  %p1893_p4 = por %p1892_p6, %p1891_p2 }
  0x24   : > { %p1887_p1 = pneg %p1886_p9 }
  0x26   : > { %p1894_p8 = pnand %p1893_p4, %p1887_p1 }
  0x28   : > { %1897 = shalt.err (!%p1894_p8)
}
  0x29   : > { %s2090_s15 = smov 1536   ;;  %s2091_s16 = smov 96  }
  0x2a   : > { %1810 = dma.hbm_to_vmem [thread:$0]  (!%p2176_p10), %s2463_s1, 49152, %s190_s28, [#allocation6], %s2090_s15, %s2090_s15, %s2091_s16  }
  0x2b   : > { %s1898_s8 = scalar_lea.hbm %s2464_s2, 192 }
  0x2c   : > { %p1899_p11 = scmp.ne.s32.totalorder %s2464_s2, %s1898_s8  ;;  %p1905_p4 = scmp.lt.u32.totalorder %s1898_s8, %s2464_s2 }
  0x2e   : > { %p1901_p1 = pnand %p1899_p11, %p1872_p12 }
  0x30   : > { %p1902_p2 = pneg %p1901_p1 }
  0x32   : > { %p1907_p6 = pnand %p1905_p4, %p1902_p2 }
  0x34   : > { %1910 = shalt.err (!%p1907_p6)
}
  0x35   : > { %s1911_s28 = scalar_lea.vmem %s2180_s6, 192  ;;  %p1919_p3 = scmp.lt.s32.totalorder %s2180_s6, %s2180_s6 }
  0x36   : > { %p1912_p8 = scmp.ne.s32.totalorder %s2180_s6, %s1911_s28  ;;  %p1920_p5 = scmp.lt.s32.totalorder %s1911_s28, %s1911_s28 }
  0x38   : > { %p1914_p13 = pnand %p1912_p8, %p1872_p12  ;;  %p1921_p7 = por %p1920_p5, %p1919_p3 }
  0x3a   : > { %p1915_p0 = pneg %p1914_p13 }
  0x3c   : > { %p1922_p9 = pnand %p1921_p7, %p1915_p0 }
  0x3e   : > { %1925 = shalt.err (!%p1922_p9)
}
  0x3f   : > { %1813 = dma.hbm_to_vmem [thread:$0]  (!%p2176_p10), %s2464_s2, 192, %s2180_s6, [#allocation6]  }
  0x40   : > { %s2230_s15 = sadd.s32 1, %s2086_s21   ;;  %s33_s29 = sadd.s32 1, %s2082_s20 }
  0x41   : > { %s30_s16 = ssub.s32 %s2086_s21, %s2230_s15  ;;  %p40_p12 = scmp.ne.s32.totalorder %s2082_s20, %s2078_s19 }
  0x42   : > { %p31_p11 = scmp.eq.s32.totalorder %s30_s16, 0  ;;  %p41_p1 = scmp.eq.s32.totalorder %s2086_s21, 0 }
  0x43   : > { %p2475_p2 = scmp.eq.s32.totalorder %s2147_s22, 3  ;;  %p1830_p6 = scmp.lt.s32.totalorder %s2086_s21, 4 }
  0x44   : > { %s2246_s27 = scalar_select %p31_p11, %s2082_s20, %s33_s29  }
  0x45   : > { %p2240_p4 = por %p2475_p2, %p40_p12  ;;  %p42_p8 = por %p41_p1, %p40_p12 }
  0x46   : > { %s214_s30 = sand.u32 1, %s2082_s20   ;;  %s1403_s6 = sshll.u32 %s2086_s21, 8 }
  0x47   : > { %s1382_s7 = sshll.u32 %s214_s30, 4  ;;  %s2253_s10 = scalar_lea.hbm %s2462_s0, %s1403_s6 }
  0x48   : > { %s218_s11 = scalar_lea.vmem [#allocation2], %s1382_s7  ;;  %p2257_p10 = pnand %p1830_p6, %p42_p8 }
  0x49   : > { %s226_s12 = sshll.u32 %s218_s11, 4  ;;  %s215_s13 = scalar_lea.sflag [#allocation3], %s214_s30  ;;  %s2255_s12 = int_to_ptr.vmem [resolvable:$true] %s226_s12 }
  0x4a   : > { %s1926_s14 = scalar_lea.hbm %s2253_s10, 256  ;;  %p1928_p0 = pneg %p2257_p10 }
  0x4b   : > { %p1927_p13 = scmp.ne.s32.totalorder %s2253_s10, %s1926_s14  ;;  %s1931_s7 = scalar_lea.hbm %s2462_s0, 1024 }
  0x4c   : > { %p1932_p7 = scmp.lt.u32.totalorder %s2253_s10, %s2462_s0  ;;  %p1933_p9 = scmp.lt.u32.totalorder %s1931_s7, %s1926_s14 }
  0x4d   : > { %p1929_p3 = pnand %p1928_p0, %p1927_p13  ;;  %p1935_p11 = scmp.lt.u32.totalorder %s1926_s14, %s2253_s10 }
  0x4e   : > { %p1934_p12 = por %p1933_p9, %p1932_p7 }
  0x4f   : > { %p1930_p5 = pneg %p1929_p3 }
  0x50   : > { %p1936_p1 = por %p1935_p11, %p1934_p12 }
  0x52   : > { %p1937_p2 = pnand %p1936_p1, %p1930_p5 }
  0x54   : > { %1940 = shalt.err (!%p1937_p2)
}
  0x55   : > { %s1941_s30 = scalar_lea.vmem %s2255_s12, 256  ;;  %s2092_s9 = smov [#allocation2]  }
  0x56   : > { %p1942_p6 = scmp.ne.s32.totalorder %s2255_s12, %s1941_s30  ;;  %s1946_s11 = sshll.u32 %s2092_s9, 4  ;;  %s1947_s11 = int_to_ptr.vmem [resolvable:$false] %s1946_s11 }
  0x57   : > { %s1948_s29 = scalar_lea.vmem %s1947_s11, 512  ;;  %p1949_p3 = scmp.lt.s32.totalorder %s2255_s12, %s1947_s11 }
  0x58   : > { %p1944_p8 = pnand %p1942_p6, %p1928_p0  ;;  %p1950_p7 = scmp.lt.s32.totalorder %s1948_s29, %s1941_s30 }
  0x5a   : > { %p1945_p13 = pneg %p1944_p8  ;;  %p1951_p9 = por %p1950_p7, %p1949_p3 }
  0x5c   : > { %p1952_p12 = pnand %p1951_p9, %p1945_p13 }
  0x5e   : > { %1955 = shalt.err (!%p1952_p12)
}
  0x5f   : > { %1817 = dma.hbm_to_vmem [thread:$0]  (!%p2257_p10), %s2253_s10, 256, %s2255_s12, %s215_s13  }
  0x60   : > { %p2478_p5 = scmp.ne.s32.totalorder %s2473_s26, 0 }
  0x61   : > { %s2289_s14 = sand.u32 (!%p2478_p5), 1, %s2078_s19   ;;  %p2479_p0 = scmp.ne.s32.totalorder (!%p2478_p5), %s2471_s24, 0 }
  0x62   : > { %235 = sbr.rel (%p2478_p5) target bundleno = 535 (0x217), region = 32  ;;  %s1386_s16 = sshll.u32 (!%p2478_p5), %s2289_s14, 4 }
  0x63   : > { %s238_s7 = scalar_lea.sflag (!%p2478_p5), [#allocation3], %s2289_s14  ;;  %s2293_s6 = scalar_lea.vmem (!%p2478_p5), [#allocation2], %s1386_s16 }
  0x69   : > { %2057 = dma.done.wait (%p2479_p0), %s238_s7, 256  }
  0x6a   : > { %2059 = vsyncadd (%p2479_p0), %s238_s7, 4294967040  ;;  %p2480_p10 = scmp.eq.s32.totalorder %s2147_s22, 0 }
  0x6c   : > { %2061 = dma.done.wait (%p2480_p10), [#allocation6], 49344   ;;  %p2481_p11 = pmov %p2480_p10 }
  0x6d   : > { %v289_v0 = vld [vmem:[#allocation5 + $0x8] sm:$0xff]  ;;  %v291_v2 = vld [vmem:[#allocation5 + $0x18] sm:$0xff]  ;;  %v288_v5 = vld [vmem:[#allocation5] sm:$0xff]  ;;  %s2328_s24 = sshll.u32 %s2289_s14, 5  ;;  %s2340_s10 = sshll.u32 %s2147_s22, 9 }
  0x6e   : > { %2063 = vsyncadd (%p2481_p11), [#allocation6], 4294917952  ;;  %v301_v1 = vld [vmem:[#allocation5 + $0x68] sm:$0xff]  ;;  %v303_v4 = vld [vmem:[#allocation5 + $0x78] sm:$0xff]  ;;  %s271_s26 = scalar_lea.vmem [#allocation8], %s2328_s24  ;;  %s2346_s13 = scalar_lea.hbm %s2465_s3, %s2340_s10 }
  0x6f   : > { %v1407_v3 = vpack.c.bf16 %v301_v1, %v289_v0  ;;  %v300_v6 = vld [vmem:[#allocation5 + $0x60] sm:$0xff]  ;;  %v1471_v7 = vpack.c.bf16 %v303_v4, %v291_v2  ;;  %v290_v9 = vld [vmem:[#allocation5 + $0x10] sm:$0xff]  ;;  %v313_v11 = vld [vmem:[#allocation5 + $0xc8] sm:$0xff]  ;;  %s1199_s8 = sshll.u32 %s271_s26, 4  ;;  %s1175_s30 = scalar_lea.sflag [#allocation4], %s2289_s14  ;;  %s1200_s8 = int_to_ptr.vmem [resolvable:$true] %s1199_s8 }
  0x70   : > { %v1409_v8 = vpack.c.bf16 %v300_v6, %v288_v5  ;;  %v302_v10 = vld [vmem:[#allocation5 + $0x70] sm:$0xff]  ;;  %v325_v13 = vld [vmem:[#allocation5 + $0x128] sm:$0xff]  ;;  %v315_v14 = vld [vmem:[#allocation5 + $0xd8] sm:$0xff]  ;;  %s1956_s9 = scalar_lea.vmem %s1200_s8, 512  ;;  %s2093_s11 = smov [#allocation8]  }
  0x71   : > { %1408 = vmatprep.subr.bf16.mxu0 %v1407_v3  ;;  %v1473_v12 = vpack.c.bf16 %v302_v10, %v290_v9  ;;  %v327_v15 = vld [vmem:[#allocation5 + $0x138] sm:$0xff]  ;;  %1472 = vmatprep.subr.bf16.mxu1 %v1471_v7  ;;  %v1411_v16 = vpack.c.bf16 %v325_v13, %v313_v11  ;;  %v312_v18 = vld [vmem:[#allocation5 + $0xc0] sm:$0xff]  ;;  %v314_v20 = vld [vmem:[#allocation5 + $0xd0] sm:$0xff]  ;;  %p1957_p1 = scmp.ne.s32.totalorder %s1200_s8, %s1956_s9  ;;  %s1960_s29 = sshll.u32 %s2093_s11, 4  ;;  %s1961_s29 = int_to_ptr.vmem [resolvable:$false] %s1960_s29 }
  0x72   : > { %1410 = vmatpush1.bf16.msra.mxu0 %v1409_v8  ;;  %v1475_v17 = vpack.c.bf16 %v327_v15, %v315_v14  ;;  %v324_v19 = vld [vmem:[#allocation5 + $0x120] sm:$0xff]  ;;  %v326_v22 = vld [vmem:[#allocation5 + $0x130] sm:$0xff]  ;;  %v337_v23 = vld [vmem:[#allocation5 + $0x188] sm:$0xff]  ;;  %s1962_s16 = scalar_lea.vmem %s1961_s29, 1024  ;;  %p1963_p8 = scmp.lt.s32.totalorder %s1200_s8, %s1961_s29 }
  0x73   : > { %1474 = vmatpush1.bf16.msra.mxu1 %v1473_v12  ;;  %v1413_v21 = vpack.c.bf16 %v324_v19, %v312_v18  ;;  %v349_v24 = vld [vmem:[#allocation5 + $0x1e8] sm:$0xff]  ;;  %1412 = vmatprep.subr.bf16.mxu0 %v1411_v16  ;;  %v1477_v25 = vpack.c.bf16 %v326_v22, %v314_v20  ;;  %v339_v27 = vld [vmem:[#allocation5 + $0x198] sm:$0xff]  ;;  %v336_v29 = vld [vmem:[#allocation5 + $0x180] sm:$0xff]  ;;  %p1958_p2 = pnand %p1957_p1, %p2240_p4  ;;  %p1964_p13 = scmp.lt.s32.totalorder %s1962_s16, %s1956_s9 }
  0x74   : > { %1476 = vmatprep.subr.bf16.mxu1 %v1475_v17  ;;  %v1415_v26 = vpack.c.bf16 %v349_v24, %v337_v23  ;;  %v351_v28 = vld [vmem:[#allocation5 + $0x1f8] sm:$0xff]  ;;  %v348_v31 = vld [vmem:[#allocation5 + $0x1e0] sm:$0xff]  ;;  %v338_v32 = vld [vmem:[#allocation5 + $0x190] sm:$0xff] }
  0x75   : > { %v1479_v30 = vpack.c.bf16 %v351_v28, %v339_v27  ;;  %v350_v33 = vld [vmem:[#allocation5 + $0x1f0] sm:$0xff]  ;;  %v1417_v34 = vpack.c.bf16 %v348_v31, %v336_v29  ;;  %v361_v35 = vld [vmem:[#allocation5 + $0x248] sm:$0xff]  ;;  %v363_v37 = vld [vmem:[#allocation5 + $0x258] sm:$0xff]  ;;  %p1959_p6 = pneg %p1958_p2  ;;  %p1965_p3 = por %p1964_p13, %p1963_p8 }
  0x76   : > { %1414 = vmatpush1.bf16.msra.mxu0 %v1413_v21  ;;  %v373_v36 = vld [vmem:[#allocation5 + $0x2a8] sm:$0xff]  ;;  %v1481_v38 = vpack.c.bf16 %v350_v33, %v338_v32  ;;  %v375_v40 = vld [vmem:[#allocation5 + $0x2b8] sm:$0xff]  ;;  %v360_v41 = vld [vmem:[#allocation5 + $0x240] sm:$0xff] }
  0x77   : > { %1478 = vmatpush1.bf16.msra.mxu1 %v1477_v25  ;;  %1416 = vmatprep.subr.bf16.mxu0 %v1415_v26  ;;  %v1419_v39 = vpack.c.bf16 %v373_v36, %v361_v35  ;;  %v372_v42 = vld [vmem:[#allocation5 + $0x2a0] sm:$0xff]  ;;  %v1483_v43 = vpack.c.bf16 %v375_v40, %v363_v37  ;;  %v362_v44 = vld [vmem:[#allocation5 + $0x250] sm:$0xff]  ;;  %v385_v46 = vld [vmem:[#allocation5 + $0x308] sm:$0xff]  ;;  %p1966_p7 = pnand %p1965_p3, %p1959_p6 }
  0x78   : > { %1480 = vmatprep.subr.bf16.mxu1 %v1479_v30  ;;  %v374_v45 = vld [vmem:[#allocation5 + $0x2b0] sm:$0xff]  ;;  %v397_v47 = vld [vmem:[#allocation5 + $0x368] sm:$0xff]  ;;  %v387_v48 = vld [vmem:[#allocation5 + $0x318] sm:$0xff]  ;;  %v1421_v50 = vpack.c.bf16 %v372_v42, %v360_v41 }
  0x79   : > { %v399_v49 = vld [vmem:[#allocation5 + $0x378] sm:$0xff]  ;;  %v1485_v51 = vpack.c.bf16 %v374_v45, %v362_v44  ;;  %v1423_v52 = vpack.c.bf16 %v397_v47, %v385_v46  ;;  %v384_v53 = vld [vmem:[#allocation5 + $0x300] sm:$0xff]  ;;  %v386_v55 = vld [vmem:[#allocation5 + $0x310] sm:$0xff] }
  0x7a   : > { %1418 = vmatpush1.bf16.msra.mxu0 %v1417_v34  ;;  %v396_v54 = vld [vmem:[#allocation5 + $0x360] sm:$0xff]  ;;  %v1487_v56 = vpack.c.bf16 %v399_v49, %v387_v48  ;;  %v398_v57 = vld [vmem:[#allocation5 + $0x370] sm:$0xff]  ;;  %v409_v58 = vld [vmem:[#allocation5 + $0x3c8] sm:$0xff] }
  0x7b   : > { %1482 = vmatpush1.bf16.msra.mxu1 %v1481_v38  ;;  %1420 = vmatprep.subr.bf16.mxu0 %v1419_v39  ;;  %v421_v59 = vld [vmem:[#allocation5 + $0x428] sm:$0xff]  ;;  %v411_v60 = vld [vmem:[#allocation5 + $0x3d8] sm:$0xff]  ;;  %v1425_v62 = vpack.c.bf16 %v396_v54, %v384_v53  ;;  %v1489_v63 = vpack.c.bf16 %v398_v57, %v386_v55  ;;  %v408_v1 = vld [vmem:[#allocation5 + $0x3c0] sm:$0xff] }
  0x7c   : > { %1484 = vmatprep.subr.bf16.mxu1 %v1483_v43  ;;  %v423_v61 = vld [vmem:[#allocation5 + $0x438] sm:$0xff]  ;;  %v1427_v0 = vpack.c.bf16 %v421_v59, %v409_v58  ;;  %v420_v2 = vld [vmem:[#allocation5 + $0x420] sm:$0xff]  ;;  %v410_v3 = vld [vmem:[#allocation5 + $0x3d0] sm:$0xff] }
  0x7d   : > { %v1491_v4 = vpack.c.bf16 %v423_v61, %v411_v60  ;;  %v422_v5 = vld [vmem:[#allocation5 + $0x430] sm:$0xff]  ;;  %v433_v6 = vld [vmem:[#allocation5 + $0x488] sm:$0xff]  ;;  %v435_v8 = vld [vmem:[#allocation5 + $0x498] sm:$0xff]  ;;  %v1429_v10 = vpack.c.bf16 %v420_v2, %v408_v1 }
  0x7e   : > { %1422 = vmatpush1.bf16.msra.mxu0 %v1421_v50  ;;  %v445_v7 = vld [vmem:[#allocation5 + $0x4e8] sm:$0xff]  ;;  %v447_v9 = vld [vmem:[#allocation5 + $0x4f8] sm:$0xff]  ;;  %v1493_v11 = vpack.c.bf16 %v422_v5, %v410_v3  ;;  %v432_v13 = vld [vmem:[#allocation5 + $0x480] sm:$0xff] }
  0x7f   : > { %1486 = vmatpush1.bf16.msra.mxu1 %v1485_v51  ;;  %1424 = vmatprep.subr.bf16.mxu0 %v1423_v52  ;;  %v1431_v12 = vpack.c.bf16 %v445_v7, %v433_v6  ;;  %v444_v14 = vld [vmem:[#allocation5 + $0x4e0] sm:$0xff]  ;;  %v434_v15 = vld [vmem:[#allocation5 + $0x490] sm:$0xff]  ;;  %v1495_v16 = vpack.c.bf16 %v447_v9, %v435_v8  ;;  %v457_v18 = vld [vmem:[#allocation5 + $0x548] sm:$0xff] }
  0x80   : > { %1488 = vmatprep.subr.bf16.mxu1 %v1487_v56  ;;  %v446_v17 = vld [vmem:[#allocation5 + $0x4f0] sm:$0xff]  ;;  %v469_v19 = vld [vmem:[#allocation5 + $0x5a8] sm:$0xff]  ;;  %v459_v20 = vld [vmem:[#allocation5 + $0x558] sm:$0xff]  ;;  %v1433_v22 = vpack.c.bf16 %v444_v14, %v432_v13 }
  0x81   : > { %v471_v21 = vld [vmem:[#allocation5 + $0x5b8] sm:$0xff]  ;;  %v1497_v23 = vpack.c.bf16 %v446_v17, %v434_v15  ;;  %v1435_v24 = vpack.c.bf16 %v469_v19, %v457_v18  ;;  %v456_v25 = vld [vmem:[#allocation5 + $0x540] sm:$0xff]  ;;  %v458_v27 = vld [vmem:[#allocation5 + $0x550] sm:$0xff] }
  0x82   : > { %1426 = vmatpush1.bf16.msra.mxu0 %v1425_v62  ;;  %v468_v26 = vld [vmem:[#allocation5 + $0x5a0] sm:$0xff]  ;;  %v1499_v28 = vpack.c.bf16 %v471_v21, %v459_v20  ;;  %v470_v29 = vld [vmem:[#allocation5 + $0x5b0] sm:$0xff]  ;;  %v481_v30 = vld [vmem:[#allocation5 + $0x608] sm:$0xff] }
  0x83   : > { %1490 = vmatpush1.bf16.msra.mxu1 %v1489_v63  ;;  %1428 = vmatprep.subr.bf16.mxu0 %v1427_v0  ;;  %v493_v31 = vld [vmem:[#allocation5 + $0x668] sm:$0xff]  ;;  %v483_v32 = vld [vmem:[#allocation5 + $0x618] sm:$0xff]  ;;  %v1437_v34 = vpack.c.bf16 %v468_v26, %v456_v25  ;;  %v1501_v35 = vpack.c.bf16 %v470_v29, %v458_v27  ;;  %v480_v37 = vld [vmem:[#allocation5 + $0x600] sm:$0xff] }
  0x84   : > { %1492 = vmatprep.subr.bf16.mxu1 %v1491_v4  ;;  %v495_v33 = vld [vmem:[#allocation5 + $0x678] sm:$0xff]  ;;  %v1439_v36 = vpack.c.bf16 %v493_v31, %v481_v30  ;;  %v492_v38 = vld [vmem:[#allocation5 + $0x660] sm:$0xff]  ;;  %v482_v39 = vld [vmem:[#allocation5 + $0x610] sm:$0xff] }
  0x85   : > { %v1503_v40 = vpack.c.bf16 %v495_v33, %v483_v32  ;;  %v494_v41 = vld [vmem:[#allocation5 + $0x670] sm:$0xff]  ;;  %v505_v42 = vld [vmem:[#allocation5 + $0x6c8] sm:$0xff]  ;;  %v507_v44 = vld [vmem:[#allocation5 + $0x6d8] sm:$0xff]  ;;  %v1441_v46 = vpack.c.bf16 %v492_v38, %v480_v37 }
  0x86   : > { %1430 = vmatpush1.bf16.msra.mxu0 %v1429_v10  ;;  %v517_v43 = vld [vmem:[#allocation5 + $0x728] sm:$0xff]  ;;  %v519_v45 = vld [vmem:[#allocation5 + $0x738] sm:$0xff]  ;;  %v1505_v47 = vpack.c.bf16 %v494_v41, %v482_v39  ;;  %v504_v49 = vld [vmem:[#allocation5 + $0x6c0] sm:$0xff] }
  0x87   : > { %1494 = vmatpush1.bf16.msra.mxu1 %v1493_v11  ;;  %1432 = vmatprep.subr.bf16.mxu0 %v1431_v12  ;;  %v1443_v48 = vpack.c.bf16 %v517_v43, %v505_v42  ;;  %v516_v50 = vld [vmem:[#allocation5 + $0x720] sm:$0xff]  ;;  %v506_v51 = vld [vmem:[#allocation5 + $0x6d0] sm:$0xff]  ;;  %v1507_v52 = vpack.c.bf16 %v519_v45, %v507_v44  ;;  %v529_v54 = vld [vmem:[#allocation5 + $0x788] sm:$0xff] }
  0x88   : > { %1496 = vmatprep.subr.bf16.mxu1 %v1495_v16  ;;  %v518_v53 = vld [vmem:[#allocation5 + $0x730] sm:$0xff]  ;;  %v541_v55 = vld [vmem:[#allocation5 + $0x7e8] sm:$0xff]  ;;  %v531_v56 = vld [vmem:[#allocation5 + $0x798] sm:$0xff]  ;;  %v1445_v58 = vpack.c.bf16 %v516_v50, %v504_v49 }
  0x89   : > { %v543_v57 = vld [vmem:[#allocation5 + $0x7f8] sm:$0xff]  ;;  %v1509_v59 = vpack.c.bf16 %v518_v53, %v506_v51  ;;  %v1447_v60 = vpack.c.bf16 %v541_v55, %v529_v54  ;;  %v528_v61 = vld [vmem:[#allocation5 + $0x780] sm:$0xff]  ;;  %v530_v63 = vld [vmem:[#allocation5 + $0x790] sm:$0xff] }
  0x8a   : > { %1434 = vmatpush1.bf16.msra.mxu0 %v1433_v22  ;;  %v540_v62 = vld [vmem:[#allocation5 + $0x7e0] sm:$0xff]  ;;  %v1511_v0 = vpack.c.bf16 %v543_v57, %v531_v56  ;;  %v542_v1 = vld [vmem:[#allocation5 + $0x7f0] sm:$0xff]  ;;  %v553_v2 = vld [vmem:[#allocation5 + $0x848] sm:$0xff] }
  0x8b   : > { %1498 = vmatpush1.bf16.msra.mxu1 %v1497_v23  ;;  %1436 = vmatprep.subr.bf16.mxu0 %v1435_v24  ;;  %v565_v3 = vld [vmem:[#allocation5 + $0x8a8] sm:$0xff]  ;;  %v555_v4 = vld [vmem:[#allocation5 + $0x858] sm:$0xff]  ;;  %v1449_v6 = vpack.c.bf16 %v540_v62, %v528_v61  ;;  %v552_v7 = vld [vmem:[#allocation5 + $0x840] sm:$0xff]  ;;  %v1513_v8 = vpack.c.bf16 %v542_v1, %v530_v63 }
  0x8c   : > { %1500 = vmatprep.subr.bf16.mxu1 %v1499_v28  ;;  %v567_v5 = vld [vmem:[#allocation5 + $0x8b8] sm:$0xff]  ;;  %v1451_v9 = vpack.c.bf16 %v565_v3, %v553_v2  ;;  %v564_v10 = vld [vmem:[#allocation5 + $0x8a0] sm:$0xff]  ;;  %v554_v11 = vld [vmem:[#allocation5 + $0x850] sm:$0xff] }
  0x8d   : > { %v566_v12 = vld [vmem:[#allocation5 + $0x8b0] sm:$0xff]  ;;  %v1515_v13 = vpack.c.bf16 %v567_v5, %v555_v4  ;;  %v577_v14 = vld [vmem:[#allocation5 + $0x908] sm:$0xff]  ;;  %v579_v17 = vld [vmem:[#allocation5 + $0x918] sm:$0xff]  ;;  %v1453_v19 = vpack.c.bf16 %v564_v10, %v552_v7 }
  0x8e   : > { %1438 = vmatpush1.bf16.msra.mxu0 %v1437_v34  ;;  %v589_v15 = vld [vmem:[#allocation5 + $0x968] sm:$0xff]  ;;  %v591_v18 = vld [vmem:[#allocation5 + $0x978] sm:$0xff]  ;;  %v1517_v20 = vpack.c.bf16 %v566_v12, %v554_v11  ;;  %v576_v22 = vld [vmem:[#allocation5 + $0x900] sm:$0xff] }
  0x8f   : > { %1502 = vmatpush1.bf16.msra.mxu1 %v1501_v35  ;;  %1440 = vmatprep.subr.bf16.mxu0 %v1439_v36  ;;  %v2304_v16 = vld [vmem:[%s2293_s6 + $0x8] sm:$0xff]  ;;  %v1455_v21 = vpack.c.bf16 %v589_v15, %v577_v14  ;;  %v588_v23 = vld [vmem:[#allocation5 + $0x960] sm:$0xff]  ;;  %v578_v24 = vld [vmem:[#allocation5 + $0x910] sm:$0xff]  ;;  %v1519_v25 = vpack.c.bf16 %v591_v18, %v579_v17 }
  0x90   : > { %1504 = vmatprep.subr.bf16.mxu1 %v1503_v40  ;;  %800 = vmatprep.mubr.f32.mxu0 %v2304_v16  ;;  %v590_v26 = vld [vmem:[#allocation5 + $0x970] sm:$0xff]  ;;  %v601_v27 = vld [vmem:[#allocation5 + $0x9c8] sm:$0xff]  ;;  %v603_v29 = vld [vmem:[#allocation5 + $0x9d8] sm:$0xff]  ;;  %v1457_v31 = vpack.c.bf16 %v588_v23, %v576_v22 }
  0x91   : > { %871 = vmatprep.mubr.f32.mxu1 %v2304_v16  ;;  %v613_v28 = vld [vmem:[#allocation5 + $0xa28] sm:$0xff]  ;;  %v615_v30 = vld [vmem:[#allocation5 + $0xa38] sm:$0xff]  ;;  %v1521_v32 = vpack.c.bf16 %v590_v26, %v578_v24  ;;  %v600_v34 = vld [vmem:[#allocation5 + $0x9c0] sm:$0xff] }
  0x92   : > { %1442 = vmatpush1.bf16.msra.mxu0 %v1441_v46  ;;  %v1459_v33 = vpack.c.bf16 %v613_v28, %v601_v27  ;;  %v612_v35 = vld [vmem:[#allocation5 + $0xa20] sm:$0xff]  ;;  %v602_v36 = vld [vmem:[#allocation5 + $0x9d0] sm:$0xff]  ;;  %v1523_v37 = vpack.c.bf16 %v615_v30, %v603_v29  ;;  %v625_v39 = vld [vmem:[#allocation5 + $0xa88] sm:$0xff] }
  0x93   : > { %1506 = vmatpush1.bf16.msra.mxu1 %v1505_v47  ;;  %1444 = vmatprep.subr.bf16.mxu0 %v1443_v48  ;;  %v614_v38 = vld [vmem:[#allocation5 + $0xa30] sm:$0xff]  ;;  %v637_v40 = vld [vmem:[#allocation5 + $0xae8] sm:$0xff]  ;;  %v627_v41 = vld [vmem:[#allocation5 + $0xa98] sm:$0xff]  ;;  %v1461_v43 = vpack.c.bf16 %v612_v35, %v600_v34 }
  0x94   : > { %1508 = vmatprep.subr.bf16.mxu1 %v1507_v52  ;;  %v639_v42 = vld [vmem:[#allocation5 + $0xaf8] sm:$0xff]  ;;  %v1525_v44 = vpack.c.bf16 %v614_v38, %v602_v36  ;;  %v1463_v45 = vpack.c.bf16 %v637_v40, %v625_v39  ;;  %v624_v46 = vld [vmem:[#allocation5 + $0xa80] sm:$0xff]  ;;  %v626_v48 = vld [vmem:[#allocation5 + $0xa90] sm:$0xff] }
  0x95   : > { %v636_v47 = vld [vmem:[#allocation5 + $0xae0] sm:$0xff]  ;;  %v1527_v49 = vpack.c.bf16 %v639_v42, %v627_v41  ;;  %v638_v50 = vld [vmem:[#allocation5 + $0xaf0] sm:$0xff]  ;;  %v649_v51 = vld [vmem:[#allocation5 + $0xb48] sm:$0xff] }
  0x96   : > { %1446 = vmatpush1.bf16.msra.mxu0 %v1445_v58  ;;  %v661_v52 = vld [vmem:[#allocation5 + $0xba8] sm:$0xff]  ;;  %v651_v53 = vld [vmem:[#allocation5 + $0xb58] sm:$0xff]  ;;  %v1465_v55 = vpack.c.bf16 %v636_v47, %v624_v46  ;;  %v1529_v56 = vpack.c.bf16 %v638_v50, %v626_v48  ;;  %v648_v58 = vld [vmem:[#allocation5 + $0xb40] sm:$0xff] }
  0x97   : > { %1510 = vmatpush1.bf16.msra.mxu1 %v1509_v59  ;;  %1448 = vmatprep.subr.bf16.mxu0 %v1447_v60  ;;  %v663_v54 = vld [vmem:[#allocation5 + $0xbb8] sm:$0xff]  ;;  %v1467_v57 = vpack.c.bf16 %v661_v52, %v649_v51  ;;  %v660_v59 = vld [vmem:[#allocation5 + $0xba0] sm:$0xff]  ;;  %v650_v60 = vld [vmem:[#allocation5 + $0xb50] sm:$0xff] }
  0x98   : > { %1512 = vmatprep.subr.bf16.mxu1 %v1511_v0  ;;  %v1531_v61 = vpack.c.bf16 %v663_v54, %v651_v53  ;;  %v662_v62 = vld [vmem:[#allocation5 + $0xbb0] sm:$0xff]  ;;  %v293_v63 = vld [vmem:[#allocation5 + $0x28] sm:$0xff]  ;;  %v295_v1 = vld [vmem:[#allocation5 + $0x38] sm:$0xff]  ;;  %v1469_v3 = vpack.c.bf16 %v660_v59, %v648_v58 }
  0x99   : > { %v305_v0 = vld [vmem:[#allocation5 + $0x88] sm:$0xff]  ;;  %v307_v2 = vld [vmem:[#allocation5 + $0x98] sm:$0xff]  ;;  %v1533_v4 = vpack.c.bf16 %v662_v62, %v650_v60  ;;  %v304_v7 = vld [vmem:[#allocation5 + $0x80] sm:$0xff] }
  0x9a   : > { %1450 = vmatpush1.bf16.msra.mxu0 %v1449_v6  ;;  %v1535_v5 = vpack.c.bf16 %v305_v0, %v293_v63  ;;  %v292_v6 = vld [vmem:[#allocation5 + $0x20] sm:$0xff]  ;;  %v306_v10 = vld [vmem:[#allocation5 + $0x90] sm:$0xff]  ;;  %v317_v11 = vld [vmem:[#allocation5 + $0xe8] sm:$0xff] }
  0x9b   : > { %1514 = vmatpush1.bf16.msra.mxu1 %v1513_v8  ;;  %1452 = vmatprep.subr.bf16.mxu0 %v1451_v9  ;;  %v294_v8 = vld [vmem:[#allocation5 + $0x30] sm:$0xff]  ;;  %v1599_v9 = vpack.c.bf16 %v307_v2, %v295_v1  ;;  %v329_v12 = vld [vmem:[#allocation5 + $0x148] sm:$0xff]  ;;  %v331_v14 = vld [vmem:[#allocation5 + $0x158] sm:$0xff]  ;;  %v1537_v17 = vpack.c.bf16 %v304_v7, %v292_v6 }
  0x9c   : > { %1516 = vmatprep.subr.bf16.mxu1 %v1515_v13  ;;  %v319_v13 = vld [vmem:[#allocation5 + $0xf8] sm:$0xff]  ;;  %v2309_v15 = vld [vmem:[%s2293_s6] sm:$0xff]  ;;  %v1601_v18 = vpack.c.bf16 %v306_v10, %v294_v8  ;;  %v353_v26 = vld [vmem:[#allocation5 + $0x208] sm:$0xff] }
  0x9d   : > { %v318_v22 = vld [vmem:[#allocation5 + $0xf0] sm:$0xff]  ;;  %v1603_v23 = vpack.c.bf16 %v331_v14, %v319_v13  ;;  %v343_v27 = vld [vmem:[#allocation5 + $0x1b8] sm:$0xff]  ;;  %v377_v38 = vld [vmem:[#allocation5 + $0x2c8] sm:$0xff] }
  0x9e   : > { %1454 = vmatpush1.bf16.msra.mxu0 %v1453_v19  ;;  %v1539_v19 = vpack.c.bf16 %v329_v12, %v317_v11  ;;  %v330_v24 = vld [vmem:[#allocation5 + $0x150] sm:$0xff]  ;;  %v355_v28 = vld [vmem:[#allocation5 + $0x218] sm:$0xff]  ;;  %v401_v50 = vld [vmem:[#allocation5 + $0x388] sm:$0xff] }
  0x9f   : > { %1518 = vmatpush1.bf16.msra.mxu1 %v1517_v20  ;;  %1456 = vmatprep.subr.bf16.mxu0 %v1455_v21  ;;  %v316_v20 = vld [vmem:[#allocation5 + $0xe0] sm:$0xff]  ;;  %v1605_v30 = vpack.c.bf16 %v330_v24, %v318_v22  ;;  %v342_v34 = vld [vmem:[#allocation5 + $0x1b0] sm:$0xff]  ;;  %v1607_v35 = vpack.c.bf16 %v355_v28, %v343_v27  ;;  %v367_v39 = vld [vmem:[#allocation5 + $0x278] sm:$0xff] }
  0xa0   : > { %1520 = vmatprep.subr.bf16.mxu1 %v1519_v25  ;;  %v328_v21 = vld [vmem:[#allocation5 + $0x140] sm:$0xff]  ;;  %v341_v25 = vld [vmem:[#allocation5 + $0x1a8] sm:$0xff]  ;;  %v354_v36 = vld [vmem:[#allocation5 + $0x210] sm:$0xff] }
  0xa1   : > { %v1541_v29 = vpack.c.bf16 %v328_v21, %v316_v20  ;;  %v379_v40 = vld [vmem:[#allocation5 + $0x2d8] sm:$0xff]  ;;  %v1609_v42 = vpack.c.bf16 %v354_v36, %v342_v34  ;;  %v366_v46 = vld [vmem:[#allocation5 + $0x270] sm:$0xff]  ;;  %v425_v62 = vld [vmem:[#allocation5 + $0x448] sm:$0xff] }
  0xa2   : > { %1458 = vmatpush1.bf16.msra.mxu0 %v1457_v31  ;;  %v1543_v31 = vpack.c.bf16 %v353_v26, %v341_v25  ;;  %v1611_v47 = vpack.c.bf16 %v379_v40, %v367_v39  ;;  %v378_v48 = vld [vmem:[#allocation5 + $0x2d0] sm:$0xff]  ;;  %v391_v51 = vld [vmem:[#allocation5 + $0x338] sm:$0xff]  ;;  %v449_v10 = vld [vmem:[#allocation5 + $0x508] sm:$0xff] }
  0xa3   : > { %1522 = vmatpush1.bf16.msra.mxu1 %v1521_v32  ;;  %1460 = vmatprep.subr.bf16.mxu0 %v1459_v33  ;;  %v340_v32 = vld [vmem:[#allocation5 + $0x1a0] sm:$0xff]  ;;  %v403_v52 = vld [vmem:[#allocation5 + $0x398] sm:$0xff]  ;;  %v1613_v54 = vpack.c.bf16 %v378_v48, %v366_v46  ;;  %v390_v58 = vld [vmem:[#allocation5 + $0x330] sm:$0xff] }
  0xa4   : > { %1524 = vmatprep.subr.bf16.mxu1 %v1523_v37  ;;  %v352_v33 = vld [vmem:[#allocation5 + $0x200] sm:$0xff]  ;;  %v365_v37 = vld [vmem:[#allocation5 + $0x268] sm:$0xff]  ;;  %v1615_v59 = vpack.c.bf16 %v403_v52, %v391_v51  ;;  %v402_v60 = vld [vmem:[#allocation5 + $0x390] sm:$0xff] }
  0xa5   : > { %v1545_v41 = vpack.c.bf16 %v352_v33, %v340_v32  ;;  %v415_v63 = vld [vmem:[#allocation5 + $0x3f8] sm:$0xff]  ;;  %v1617_v2 = vpack.c.bf16 %v402_v60, %v390_v58  ;;  %v414_v6 = vld [vmem:[#allocation5 + $0x3f0] sm:$0xff]  ;;  %v473_v24 = vld [vmem:[#allocation5 + $0x5c8] sm:$0xff] }
  0xa6   : > { %1462 = vmatpush1.bf16.msra.mxu0 %v1461_v43  ;;  %v1547_v43 = vpack.c.bf16 %v377_v38, %v365_v37  ;;  %v427_v0 = vld [vmem:[#allocation5 + $0x458] sm:$0xff]  ;;  %v426_v8 = vld [vmem:[#allocation5 + $0x450] sm:$0xff]  ;;  %v497_v36 = vld [vmem:[#allocation5 + $0x688] sm:$0xff] }
  0xa7   : > { %1526 = vmatpush1.bf16.msra.mxu1 %v1525_v44  ;;  %1464 = vmatprep.subr.bf16.mxu0 %v1463_v45  ;;  %v364_v44 = vld [vmem:[#allocation5 + $0x260] sm:$0xff]  ;;  %v1619_v7 = vpack.c.bf16 %v427_v0, %v415_v63  ;;  %v439_v11 = vld [vmem:[#allocation5 + $0x4b8] sm:$0xff]  ;;  %v1621_v14 = vpack.c.bf16 %v426_v8, %v414_v6  ;;  %v438_v20 = vld [vmem:[#allocation5 + $0x4b0] sm:$0xff] }
  0xa8   : > { %1528 = vmatprep.subr.bf16.mxu1 %v1527_v49  ;;  %v376_v45 = vld [vmem:[#allocation5 + $0x2c0] sm:$0xff]  ;;  %v389_v49 = vld [vmem:[#allocation5 + $0x328] sm:$0xff]  ;;  %v451_v12 = vld [vmem:[#allocation5 + $0x518] sm:$0xff] }
  0xa9   : > { %v1549_v53 = vpack.c.bf16 %v376_v45, %v364_v44  ;;  %v1623_v21 = vpack.c.bf16 %v451_v12, %v439_v11  ;;  %v450_v22 = vld [vmem:[#allocation5 + $0x510] sm:$0xff]  ;;  %v463_v25 = vld [vmem:[#allocation5 + $0x578] sm:$0xff]  ;;  %v521_v48 = vld [vmem:[#allocation5 + $0x748] sm:$0xff] }
  0xaa   : > { %1466 = vmatpush1.bf16.msra.mxu0 %v1465_v55  ;;  %v1551_v55 = vpack.c.bf16 %v401_v50, %v389_v49  ;;  %v475_v26 = vld [vmem:[#allocation5 + $0x5d8] sm:$0xff]  ;;  %v1625_v28 = vpack.c.bf16 %v450_v22, %v438_v20  ;;  %v462_v32 = vld [vmem:[#allocation5 + $0x570] sm:$0xff]  ;;  %v545_v60 = vld [vmem:[#allocation5 + $0x808] sm:$0xff] }
  0xab   : > { %1530 = vmatpush1.bf16.msra.mxu1 %v1529_v56  ;;  %1468 = vmatprep.subr.bf16.mxu0 %v1467_v57  ;;  %v388_v56 = vld [vmem:[#allocation5 + $0x320] sm:$0xff]  ;;  %v1627_v33 = vpack.c.bf16 %v475_v26, %v463_v25  ;;  %v474_v34 = vld [vmem:[#allocation5 + $0x5d0] sm:$0xff]  ;;  %v487_v37 = vld [vmem:[#allocation5 + $0x638] sm:$0xff] }
  0xac   : > { %1532 = vmatprep.subr.bf16.mxu1 %v1531_v61  ;;  %v400_v57 = vld [vmem:[#allocation5 + $0x380] sm:$0xff]  ;;  %v413_v61 = vld [vmem:[#allocation5 + $0x3e8] sm:$0xff]  ;;  %v499_v38 = vld [vmem:[#allocation5 + $0x698] sm:$0xff]  ;;  %v1629_v40 = vpack.c.bf16 %v474_v34, %v462_v32 }
  0xad   : > { %v1553_v1 = vpack.c.bf16 %v400_v57, %v388_v56  ;;  %v486_v44 = vld [vmem:[#allocation5 + $0x630] sm:$0xff]  ;;  %v1631_v45 = vpack.c.bf16 %v499_v38, %v487_v37  ;;  %v511_v49 = vld [vmem:[#allocation5 + $0x6f8] sm:$0xff]  ;;  %v569_v8 = vld [vmem:[#allocation5 + $0x8c8] sm:$0xff] }
  0xae   : > { %1470 = vmatpush1.bf16.msra.mxu0 %v1469_v3  ;;  %v1555_v3 = vpack.c.bf16 %v425_v62, %v413_v61  ;;  %v498_v46 = vld [vmem:[#allocation5 + $0x690] sm:$0xff]  ;;  %v523_v50 = vld [vmem:[#allocation5 + $0x758] sm:$0xff]  ;;  %v593_v22 = vld [vmem:[#allocation5 + $0x988] sm:$0xff] }
  0xaf   : > { %1534 = vmatpush1.bf16.msra.mxu1 %v1533_v4  ;;  %1536 = vmatprep.subr.bf16.mxu0 %v1535_v5  ;;  %v412_v4 = vld [vmem:[#allocation5 + $0x3e0] sm:$0xff]  ;;  %v1633_v52 = vpack.c.bf16 %v498_v46, %v486_v44  ;;  %v510_v56 = vld [vmem:[#allocation5 + $0x6f0] sm:$0xff]  ;;  %v1635_v57 = vpack.c.bf16 %v523_v50, %v511_v49  ;;  %v535_v61 = vld [vmem:[#allocation5 + $0x7b8] sm:$0xff] }
  0xb0   : > { %1600 = vmatprep.subr.bf16.mxu1 %v1599_v9  ;;  %v424_v5 = vld [vmem:[#allocation5 + $0x440] sm:$0xff]  ;;  %v437_v9 = vld [vmem:[#allocation5 + $0x4a8] sm:$0xff]  ;;  %v522_v58 = vld [vmem:[#allocation5 + $0x750] sm:$0xff] }
  0xb1   : > { %801 = vmatmul.mubr.f32.vlgmr.msra.gmra.mrb[0].mxu0 %v2309_v15  ;;  %v1557_v13 = vpack.c.bf16 %v424_v5, %v412_v4  ;;  %v547_v62 = vld [vmem:[#allocation5 + $0x818] sm:$0xff]  ;;  %v1637_v0 = vpack.c.bf16 %v522_v58, %v510_v56  ;;  %v534_v4 = vld [vmem:[#allocation5 + $0x7b0] sm:$0xff]  ;;  %v617_v34 = vld [vmem:[#allocation5 + $0xa48] sm:$0xff] }
  0xb2   : > { %872 = vmatmul.mubr.f32.vlgmr.msra.gmra.mrb[0].mxu1 %v2309_v15  ;;  %1538 = vmatpush1.bf16.msra.mxu0 %v1537_v17  ;;  %v1559_v17 = vpack.c.bf16 %v449_v10, %v437_v9  ;;  %v1639_v5 = vpack.c.bf16 %v547_v62, %v535_v61  ;;  %v546_v6 = vld [vmem:[#allocation5 + $0x810] sm:$0xff]  ;;  %v559_v9 = vld [vmem:[#allocation5 + $0x878] sm:$0xff]  ;;  %v641_v46 = vld [vmem:[#allocation5 + $0xb08] sm:$0xff] }
  0xb3   : > { %1602 = vmatpush1.bf16.msra.mxu1 %v1601_v18  ;;  %1540 = vmatprep.subr.bf16.mxu0 %v1539_v19  ;;  %v436_v18 = vld [vmem:[#allocation5 + $0x4a0] sm:$0xff]  ;;  %v571_v10 = vld [vmem:[#allocation5 + $0x8d8] sm:$0xff]  ;;  %v1641_v12 = vpack.c.bf16 %v546_v6, %v534_v4  ;;  %v570_v20 = vld [vmem:[#allocation5 + $0x8d0] sm:$0xff] }
  0xb4   : > { %1604 = vmatprep.subr.bf16.mxu1 %v1603_v23  ;;  %942 = vmatprep.mubr.f32.mxu0 %v2304_v16  ;;  %v448_v19 = vld [vmem:[#allocation5 + $0x500] sm:$0xff]  ;;  %v461_v23 = vld [vmem:[#allocation5 + $0x568] sm:$0xff]  ;;  %v594_v32 = vld [vmem:[#allocation5 + $0x990] sm:$0xff] }
  0xb5   : > { %1013 = vmatprep.mubr.f32.mxu1 %v2304_v16  ;;  %v1561_v27 = vpack.c.bf16 %v448_v19, %v436_v18  ;;  %v558_v18 = vld [vmem:[#allocation5 + $0x870] sm:$0xff]  ;;  %v1643_v19 = vpack.c.bf16 %v571_v10, %v559_v9  ;;  %v665_v58 = vld [vmem:[#allocation5 + $0xbc8] sm:$0xff] }
  0xb6   : > { %1542 = vmatpush1.bf16.msra.mxu0 %v1541_v29  ;;  %v1563_v29 = vpack.c.bf16 %v473_v24, %v461_v23  ;;  %v583_v23 = vld [vmem:[#allocation5 + $0x938] sm:$0xff]  ;;  %v1645_v26 = vpack.c.bf16 %v570_v20, %v558_v18  ;;  %v618_v44 = vld [vmem:[#allocation5 + $0xa50] sm:$0xff]  ;;  %v309_v6 = vld [vmem:[#allocation5 + $0xa8] sm:$0xff] }
  0xb7   : > { %1606 = vmatpush1.bf16.msra.mxu1 %v1605_v30  ;;  %1544 = vmatprep.subr.bf16.mxu0 %v1543_v31  ;;  %v460_v30 = vld [vmem:[#allocation5 + $0x560] sm:$0xff]  ;;  %v595_v24 = vld [vmem:[#allocation5 + $0x998] sm:$0xff]  ;;  %v642_v56 = vld [vmem:[#allocation5 + $0xb10] sm:$0xff] }
  0xb8   : > { %1608 = vmatprep.subr.bf16.mxu1 %v1607_v35  ;;  %v472_v31 = vld [vmem:[#allocation5 + $0x5c0] sm:$0xff]  ;;  %v485_v35 = vld [vmem:[#allocation5 + $0x628] sm:$0xff]  ;;  %v666_v4 = vld [vmem:[#allocation5 + $0xbd0] sm:$0xff] }
  0xb9   : > { %v1565_v39 = vpack.c.bf16 %v472_v31, %v460_v30  ;;  %v582_v30 = vld [vmem:[#allocation5 + $0x930] sm:$0xff]  ;;  %v1647_v31 = vpack.c.bf16 %v595_v24, %v583_v23  ;;  %v333_v20 = vld [vmem:[#allocation5 + $0x168] sm:$0xff] }
  0xba   : > { %1546 = vmatpush1.bf16.msra.mxu0 %v1545_v41  ;;  %v1567_v41 = vpack.c.bf16 %v497_v36, %v485_v35  ;;  %v607_v35 = vld [vmem:[#allocation5 + $0x9f8] sm:$0xff]  ;;  %v1649_v38 = vpack.c.bf16 %v594_v32, %v582_v30  ;;  %v310_v18 = vld [vmem:[#allocation5 + $0xb0] sm:$0xff]  ;;  %v357_v32 = vld [vmem:[#allocation5 + $0x228] sm:$0xff] }
  0xbb   : > { %1610 = vmatpush1.bf16.msra.mxu1 %v1609_v42  ;;  %1548 = vmatprep.subr.bf16.mxu0 %v1547_v43  ;;  %v484_v42 = vld [vmem:[#allocation5 + $0x620] sm:$0xff]  ;;  %v619_v36 = vld [vmem:[#allocation5 + $0xa58] sm:$0xff]  ;;  %v334_v30 = vld [vmem:[#allocation5 + $0x170] sm:$0xff] }
  0xbc   : > { %1612 = vmatprep.subr.bf16.mxu1 %v1611_v47  ;;  %v496_v43 = vld [vmem:[#allocation5 + $0x680] sm:$0xff]  ;;  %v509_v47 = vld [vmem:[#allocation5 + $0x6e8] sm:$0xff] }
  0xbd   : > { %v1569_v51 = vpack.c.bf16 %v496_v43, %v484_v42  ;;  %v606_v42 = vld [vmem:[#allocation5 + $0x9f0] sm:$0xff]  ;;  %v1651_v43 = vpack.c.bf16 %v619_v36, %v607_v35 }
  0xbe   : > { %1550 = vmatpush1.bf16.msra.mxu0 %v1549_v53  ;;  %v1571_v53 = vpack.c.bf16 %v521_v48, %v509_v47  ;;  %v631_v47 = vld [vmem:[#allocation5 + $0xab8] sm:$0xff]  ;;  %v1653_v50 = vpack.c.bf16 %v618_v44, %v606_v42  ;;  %v358_v42 = vld [vmem:[#allocation5 + $0x230] sm:$0xff]  ;;  %v381_v44 = vld [vmem:[#allocation5 + $0x2e8] sm:$0xff] }
  0xbf   : > { %1614 = vmatpush1.bf16.msra.mxu1 %v1613_v54  ;;  %1552 = vmatprep.subr.bf16.mxu0 %v1551_v55  ;;  %v508_v54 = vld [vmem:[#allocation5 + $0x6e0] sm:$0xff]  ;;  %v643_v48 = vld [vmem:[#allocation5 + $0xb18] sm:$0xff] }
  0xc0   : > { %1616 = vmatprep.subr.bf16.mxu1 %v1615_v59  ;;  %v520_v55 = vld [vmem:[#allocation5 + $0x740] sm:$0xff]  ;;  %v533_v59 = vld [vmem:[#allocation5 + $0x7a8] sm:$0xff] }
  0xc1   : > { %v1573_v63 = vpack.c.bf16 %v520_v55, %v508_v54  ;;  %v630_v54 = vld [vmem:[#allocation5 + $0xab0] sm:$0xff]  ;;  %v1655_v55 = vpack.c.bf16 %v643_v48, %v631_v47 }
  0xc2   : > { %1554 = vmatpush1.bf16.msra.mxu0 %v1553_v1  ;;  %v1575_v1 = vpack.c.bf16 %v545_v60, %v533_v59  ;;  %v655_v59 = vld [vmem:[#allocation5 + $0xb78] sm:$0xff]  ;;  %v1657_v62 = vpack.c.bf16 %v642_v56, %v630_v54  ;;  %v382_v54 = vld [vmem:[#allocation5 + $0x2f0] sm:$0xff]  ;;  %v405_v56 = vld [vmem:[#allocation5 + $0x3a8] sm:$0xff] }
  0xc3   : > { %1618 = vmatpush1.bf16.msra.mxu1 %v1617_v2  ;;  %1556 = vmatprep.subr.bf16.mxu0 %v1555_v3  ;;  %v532_v2 = vld [vmem:[#allocation5 + $0x7a0] sm:$0xff]  ;;  %v667_v60 = vld [vmem:[#allocation5 + $0xbd8] sm:$0xff] }
  0xc4   : > { %1620 = vmatprep.subr.bf16.mxu1 %v1619_v7  ;;  %v544_v3 = vld [vmem:[#allocation5 + $0x800] sm:$0xff]  ;;  %v557_v7 = vld [vmem:[#allocation5 + $0x868] sm:$0xff] }
  0xc5   : > { %v1577_v11 = vpack.c.bf16 %v544_v3, %v532_v2  ;;  %v654_v2 = vld [vmem:[#allocation5 + $0xb70] sm:$0xff]  ;;  %v1659_v3 = vpack.c.bf16 %v667_v60, %v655_v59 }
  0xc6   : > { %1558 = vmatpush1.bf16.msra.mxu0 %v1557_v13  ;;  %v1579_v13 = vpack.c.bf16 %v569_v8, %v557_v7  ;;  %v299_v7 = vld [vmem:[#allocation5 + $0x58] sm:$0xff]  ;;  %v1661_v10 = vpack.c.bf16 %v666_v4, %v654_v2  ;;  %v417_v2 = vld [vmem:[#allocation5 + $0x408] sm:$0xff] }
  0xc7   : > { %1622 = vmatpush1.bf16.msra.mxu1 %v1621_v14  ;;  %1560 = vmatprep.subr.bf16.mxu0 %v1559_v17  ;;  %v556_v14 = vld [vmem:[#allocation5 + $0x860] sm:$0xff]  ;;  %v311_v8 = vld [vmem:[#allocation5 + $0xb8] sm:$0xff] }
  0xc8   : > { %1624 = vmatprep.subr.bf16.mxu1 %v1623_v21  ;;  %v568_v17 = vld [vmem:[#allocation5 + $0x8c0] sm:$0xff]  ;;  %v581_v21 = vld [vmem:[#allocation5 + $0x928] sm:$0xff]  ;;  %v419_v4 = vld [vmem:[#allocation5 + $0x418] sm:$0xff] }
  0xc9   : > { %v1581_v25 = vpack.c.bf16 %v568_v17, %v556_v14  ;;  %v298_v14 = vld [vmem:[#allocation5 + $0x50] sm:$0xff]  ;;  %v1727_v17 = vpack.c.bf16 %v311_v8, %v299_v7 }
  0xca   : > { %1562 = vmatpush1.bf16.msra.mxu0 %v1561_v27  ;;  %v1583_v27 = vpack.c.bf16 %v593_v22, %v581_v21  ;;  %v323_v21 = vld [vmem:[#allocation5 + $0x118] sm:$0xff]  ;;  %v1729_v24 = vpack.c.bf16 %v310_v18, %v298_v14  ;;  %v441_v14 = vld [vmem:[#allocation5 + $0x4c8] sm:$0xff] }
  0xcb   : > { %1626 = vmatpush1.bf16.msra.mxu1 %v1625_v28  ;;  %1564 = vmatprep.subr.bf16.mxu0 %v1563_v29  ;;  %v580_v28 = vld [vmem:[#allocation5 + $0x920] sm:$0xff]  ;;  %v335_v22 = vld [vmem:[#allocation5 + $0x178] sm:$0xff] }
  0xcc   : > { %1628 = vmatprep.subr.bf16.mxu1 %v1627_v33  ;;  %v592_v29 = vld [vmem:[#allocation5 + $0x980] sm:$0xff]  ;;  %v605_v33 = vld [vmem:[#allocation5 + $0x9e8] sm:$0xff]  ;;  %v443_v18 = vld [vmem:[#allocation5 + $0x4d8] sm:$0xff] }
  0xcd   : > { %v1585_v37 = vpack.c.bf16 %v592_v29, %v580_v28  ;;  %v322_v28 = vld [vmem:[#allocation5 + $0x110] sm:$0xff]  ;;  %v1731_v29 = vpack.c.bf16 %v335_v22, %v323_v21 }
  0xce   : > { %1566 = vmatpush1.bf16.msra.mxu0 %v1565_v39  ;;  %v1587_v39 = vpack.c.bf16 %v617_v34, %v605_v33  ;;  %v347_v33 = vld [vmem:[#allocation5 + $0x1d8] sm:$0xff]  ;;  %v1733_v36 = vpack.c.bf16 %v334_v30, %v322_v28  ;;  %v465_v28 = vld [vmem:[#allocation5 + $0x588] sm:$0xff] }
  0xcf   : > { %1630 = vmatpush1.bf16.msra.mxu1 %v1629_v40  ;;  %1568 = vmatprep.subr.bf16.mxu0 %v1567_v41  ;;  %v604_v40 = vld [vmem:[#allocation5 + $0x9e0] sm:$0xff]  ;;  %v359_v34 = vld [vmem:[#allocation5 + $0x238] sm:$0xff] }
  0xd0   : > { %1632 = vmatprep.subr.bf16.mxu1 %v1631_v45  ;;  %v616_v41 = vld [vmem:[#allocation5 + $0xa40] sm:$0xff]  ;;  %v629_v45 = vld [vmem:[#allocation5 + $0xaa8] sm:$0xff]  ;;  %v467_v30 = vld [vmem:[#allocation5 + $0x598] sm:$0xff] }
  0xd1   : > { %v1589_v49 = vpack.c.bf16 %v616_v41, %v604_v40  ;;  %v346_v40 = vld [vmem:[#allocation5 + $0x1d0] sm:$0xff]  ;;  %v1735_v41 = vpack.c.bf16 %v359_v34, %v347_v33 }
  0xd2   : > { %1570 = vmatpush1.bf16.msra.mxu0 %v1569_v51  ;;  %v1591_v51 = vpack.c.bf16 %v641_v46, %v629_v45  ;;  %v371_v45 = vld [vmem:[#allocation5 + $0x298] sm:$0xff]  ;;  %v1737_v48 = vpack.c.bf16 %v358_v42, %v346_v40  ;;  %v489_v40 = vld [vmem:[#allocation5 + $0x648] sm:$0xff] }
  0xd3   : > { %1634 = vmatpush1.bf16.msra.mxu1 %v1633_v52  ;;  %1572 = vmatprep.subr.bf16.mxu0 %v1571_v53  ;;  %v628_v52 = vld [vmem:[#allocation5 + $0xaa0] sm:$0xff]  ;;  %v383_v46 = vld [vmem:[#allocation5 + $0x2f8] sm:$0xff] }
  0xd4   : > { %1636 = vmatprep.subr.bf16.mxu1 %v1635_v57  ;;  %v640_v53 = vld [vmem:[#allocation5 + $0xb00] sm:$0xff]  ;;  %v653_v57 = vld [vmem:[#allocation5 + $0xb68] sm:$0xff]  ;;  %v491_v42 = vld [vmem:[#allocation5 + $0x658] sm:$0xff] }
  0xd5   : > { %v1593_v61 = vpack.c.bf16 %v640_v53, %v628_v52  ;;  %v370_v52 = vld [vmem:[#allocation5 + $0x290] sm:$0xff]  ;;  %v1739_v53 = vpack.c.bf16 %v383_v46, %v371_v45 }
  0xd6   : > { %1574 = vmatpush1.bf16.msra.mxu0 %v1573_v63  ;;  %v1595_v63 = vpack.c.bf16 %v665_v58, %v653_v57  ;;  %v395_v57 = vld [vmem:[#allocation5 + $0x358] sm:$0xff] }
  0xd7   : > { %1638 = vmatpush1.bf16.msra.mxu1 %v1637_v0  ;;  %1576 = vmatprep.subr.bf16.mxu0 %v1575_v1  ;;  %v652_v0 = vld [vmem:[#allocation5 + $0xb60] sm:$0xff]  ;;  %v407_v58 = vld [vmem:[#allocation5 + $0x3b8] sm:$0xff] }
  0xd8   : > { %1640 = vmatprep.subr.bf16.mxu1 %v1639_v5  ;;  %v664_v1 = vld [vmem:[#allocation5 + $0xbc0] sm:$0xff]  ;;  %v297_v5 = vld [vmem:[#allocation5 + $0x48] sm:$0xff] }
  0xd9   : > { %v1597_v9 = vpack.c.bf16 %v664_v1, %v652_v0  ;;  %v1743_v0 = vpack.c.bf16 %v407_v58, %v395_v57  ;;  %v406_v1 = vld [vmem:[#allocation5 + $0x3b0] sm:$0xff] }
  0xda   : > { %1578 = vmatpush1.bf16.msra.mxu0 %v1577_v11  ;;  %v1663_v11 = vpack.c.bf16 %v309_v6, %v297_v5  ;;  %v431_v5 = vld [vmem:[#allocation5 + $0x478] sm:$0xff] }
  0xdb   : > { %1642 = vmatpush1.bf16.msra.mxu1 %v1641_v12  ;;  %1580 = vmatprep.subr.bf16.mxu0 %v1579_v13  ;;  %v296_v12 = vld [vmem:[#allocation5 + $0x40] sm:$0xff] }
  0xdc   : > { %1644 = vmatprep.subr.bf16.mxu1 %v1643_v19  ;;  %v308_v13 = vld [vmem:[#allocation5 + $0xa0] sm:$0xff]  ;;  %v321_v19 = vld [vmem:[#allocation5 + $0x108] sm:$0xff] }
  0xdd   : > { %v1665_v23 = vpack.c.bf16 %v308_v13, %v296_v12  ;;  %v1747_v12 = vpack.c.bf16 %v431_v5, %v419_v4  ;;  %v430_v13 = vld [vmem:[#allocation5 + $0x470] sm:$0xff] }
  0xde   : > { %1582 = vmatpush1.bf16.msra.mxu0 %v1581_v25  ;;  %v1667_v25 = vpack.c.bf16 %v333_v20, %v321_v19  ;;  %v455_v19 = vld [vmem:[#allocation5 + $0x538] sm:$0xff] }
  0xdf   : > { %1646 = vmatpush1.bf16.msra.mxu1 %v1645_v26  ;;  %1584 = vmatprep.subr.bf16.mxu0 %v1583_v27  ;;  %v320_v26 = vld [vmem:[#allocation5 + $0x100] sm:$0xff] }
  0xe0   : > { %1648 = vmatprep.subr.bf16.mxu1 %v1647_v31  ;;  %v332_v27 = vld [vmem:[#allocation5 + $0x160] sm:$0xff]  ;;  %v345_v31 = vld [vmem:[#allocation5 + $0x1c8] sm:$0xff] }
  0xe1   : > { %v1669_v35 = vpack.c.bf16 %v332_v27, %v320_v26  ;;  %v1751_v26 = vpack.c.bf16 %v455_v19, %v443_v18  ;;  %v454_v27 = vld [vmem:[#allocation5 + $0x530] sm:$0xff] }
  0xe2   : > { %1586 = vmatpush1.bf16.msra.mxu0 %v1585_v37  ;;  %v1671_v37 = vpack.c.bf16 %v357_v32, %v345_v31  ;;  %v479_v31 = vld [vmem:[#allocation5 + $0x5f8] sm:$0xff] }
  0xe3   : > { %1650 = vmatpush1.bf16.msra.mxu1 %v1649_v38  ;;  %1588 = vmatprep.subr.bf16.mxu0 %v1587_v39  ;;  %v344_v38 = vld [vmem:[#allocation5 + $0x1c0] sm:$0xff] }
  0xe4   : > { %1652 = vmatprep.subr.bf16.mxu1 %v1651_v43  ;;  %v356_v39 = vld [vmem:[#allocation5 + $0x220] sm:$0xff]  ;;  %v369_v43 = vld [vmem:[#allocation5 + $0x288] sm:$0xff] }
  0xe5   : > { %v1673_v47 = vpack.c.bf16 %v356_v39, %v344_v38  ;;  %v1755_v38 = vpack.c.bf16 %v479_v31, %v467_v30  ;;  %v478_v39 = vld [vmem:[#allocation5 + $0x5f0] sm:$0xff] }
  0xe6   : > { %1590 = vmatpush1.bf16.msra.mxu0 %v1589_v49  ;;  %v1675_v49 = vpack.c.bf16 %v381_v44, %v369_v43  ;;  %v503_v43 = vld [vmem:[#allocation5 + $0x6b8] sm:$0xff] }
  0xe7   : > { %1654 = vmatpush1.bf16.msra.mxu1 %v1653_v50  ;;  %1592 = vmatprep.subr.bf16.mxu0 %v1591_v51  ;;  %v368_v50 = vld [vmem:[#allocation5 + $0x280] sm:$0xff] }
  0xe8   : > { %1656 = vmatprep.subr.bf16.mxu1 %v1655_v55  ;;  %v380_v51 = vld [vmem:[#allocation5 + $0x2e0] sm:$0xff]  ;;  %v393_v55 = vld [vmem:[#allocation5 + $0x348] sm:$0xff] }
  0xe9   : > { %v1677_v59 = vpack.c.bf16 %v380_v51, %v368_v50  ;;  %v1679_v60 = vpack.c.bf16 %v405_v56, %v393_v55  ;;  %v1759_v50 = vpack.c.bf16 %v503_v43, %v491_v42  ;;  %v502_v51 = vld [vmem:[#allocation5 + $0x6b0] sm:$0xff]  ;;  %v527_v55 = vld [vmem:[#allocation5 + $0x778] sm:$0xff] }
  0xea   : > { %1594 = vmatpush1.bf16.msra.mxu0 %v1593_v61  ;;  %v392_v61 = vld [vmem:[#allocation5 + $0x340] sm:$0xff] }
  0xeb   : > { %1658 = vmatpush1.bf16.msra.mxu1 %v1657_v62  ;;  %1596 = vmatprep.subr.bf16.mxu0 %v1595_v63  ;;  %v404_v62 = vld [vmem:[#allocation5 + $0x3a0] sm:$0xff]  ;;  %v394_v63 = vld [vmem:[#allocation5 + $0x350] sm:$0xff] }
  0xec   : > { %1660 = vmatprep.subr.bf16.mxu1 %v1659_v3  ;;  %v429_v3 = vld [vmem:[#allocation5 + $0x468] sm:$0xff]  ;;  %v1681_v6 = vpack.c.bf16 %v404_v62, %v392_v61  ;;  %v1745_v7 = vpack.c.bf16 %v406_v1, %v394_v63  ;;  %v526_v62 = vld [vmem:[#allocation5 + $0x770] sm:$0xff]  ;;  %v539_v1 = vld [vmem:[#allocation5 + $0x7d8] sm:$0xff] }
  0xed   : > { %v1683_v8 = vpack.c.bf16 %v429_v3, %v417_v2  ;;  %v537_v63 = vld [vmem:[#allocation5 + $0x7c8] sm:$0xff]  ;;  %v551_v2 = vld [vmem:[#allocation5 + $0x838] sm:$0xff] }
  0xee   : > { %1598 = vmatpush1.bf16.msra.mxu0 %v1597_v9  ;;  %v416_v9 = vld [vmem:[#allocation5 + $0x400] sm:$0xff] }
  0xef   : > { %1662 = vmatpush1.bf16.msra.mxu1 %v1661_v10  ;;  %1664 = vmatprep.subr.bf16.mxu0 %v1663_v11  ;;  %v428_v10 = vld [vmem:[#allocation5 + $0x460] sm:$0xff]  ;;  %v418_v11 = vld [vmem:[#allocation5 + $0x410] sm:$0xff] }
  0xf0   : > { %1728 = vmatprep.subr.bf16.mxu1 %v1727_v17  ;;  %v453_v17 = vld [vmem:[#allocation5 + $0x528] sm:$0xff]  ;;  %v1685_v20 = vpack.c.bf16 %v428_v10, %v416_v9  ;;  %v1749_v21 = vpack.c.bf16 %v430_v13, %v418_v11  ;;  %v1767_v9 = vpack.c.bf16 %v551_v2, %v539_v1  ;;  %v550_v10 = vld [vmem:[#allocation5 + $0x830] sm:$0xff]  ;;  %v563_v13 = vld [vmem:[#allocation5 + $0x898] sm:$0xff] }
  0xf1   : > { %943 = vmatmul.mubr.f32.vlgmr.msra.gmra.mrb[2].mxu0 %v2309_v15  ;;  %v1687_v22 = vpack.c.bf16 %v453_v17, %v441_v14  ;;  %v561_v11 = vld [vmem:[#allocation5 + $0x888] sm:$0xff]  ;;  %v575_v14 = vld [vmem:[#allocation5 + $0x8f8] sm:$0xff] }
  0xf2   : > { %1014 = vmatmul.mubr.f32.vlgmr.msra.gmra.mrb[2].mxu1 %v2309_v15  ;;  %1666 = vmatpush1.bf16.msra.mxu0 %v1665_v23  ;;  %v440_v23 = vld [vmem:[#allocation5 + $0x4c0] sm:$0xff] }
  0xf3   : > { %1730 = vmatpush1.bf16.msra.mxu1 %v1729_v24  ;;  %1668 = vmatprep.subr.bf16.mxu0 %v1667_v25  ;;  %v452_v24 = vld [vmem:[#allocation5 + $0x520] sm:$0xff]  ;;  %v442_v25 = vld [vmem:[#allocation5 + $0x4d0] sm:$0xff] }
  0xf4   : > { %1732 = vmatprep.subr.bf16.mxu1 %v1731_v29  ;;  %1084 = vmatprep.mubr.f32.mxu0 %v2304_v16  ;;  %v477_v29 = vld [vmem:[#allocation5 + $0x5e8] sm:$0xff]  ;;  %v1689_v32 = vpack.c.bf16 %v452_v24, %v440_v23  ;;  %v1753_v33 = vpack.c.bf16 %v454_v27, %v442_v25  ;;  %v1771_v23 = vpack.c.bf16 %v575_v14, %v563_v13  ;;  %v574_v24 = vld [vmem:[#allocation5 + $0x8f0] sm:$0xff]  ;;  %v587_v27 = vld [vmem:[#allocation5 + $0x958] sm:$0xff] }
  0xf5   : > { %1155 = vmatprep.mubr.f32.mxu1 %v2304_v16  ;;  %v1741_v16 = vpack.c.bf16 %v382_v54, %v370_v52  ;;  %v1691_v34 = vpack.c.bf16 %v477_v29, %v465_v28  ;;  %v513_v52 = vld [vmem:[#allocation5 + $0x708] sm:$0xff]  ;;  %v515_v54 = vld [vmem:[#allocation5 + $0x718] sm:$0xff]  ;;  %v672_v13 = vld [vmem:[#allocation7] sm:$0xff] }
  0xf6   : > { %1670 = vmatpush1.bf16.msra.mxu0 %v1669_v35  ;;  %v464_v35 = vld [vmem:[#allocation5 + $0x580] sm:$0xff]  ;;  %v1763_v61 = vpack.c.bf16 %v527_v55, %v515_v54  ;;  %v585_v25 = vld [vmem:[#allocation5 + $0x948] sm:$0xff]  ;;  %v599_v28 = vld [vmem:[#allocation5 + $0x9b8] sm:$0xff] }
  0xf7   : > { %1734 = vmatpush1.bf16.msra.mxu1 %v1733_v36  ;;  %1672 = vmatprep.subr.bf16.mxu0 %v1671_v37  ;;  %v476_v36 = vld [vmem:[#allocation5 + $0x5e0] sm:$0xff]  ;;  %v466_v37 = vld [vmem:[#allocation5 + $0x590] sm:$0xff] }
  0xf8   : > { %1736 = vmatprep.subr.bf16.mxu1 %v1735_v41  ;;  %v501_v41 = vld [vmem:[#allocation5 + $0x6a8] sm:$0xff]  ;;  %v1693_v44 = vpack.c.bf16 %v476_v36, %v464_v35  ;;  %v1757_v45 = vpack.c.bf16 %v478_v39, %v466_v37  ;;  %v1775_v35 = vpack.c.bf16 %v599_v28, %v587_v27  ;;  %v598_v36 = vld [vmem:[#allocation5 + $0x9b0] sm:$0xff]  ;;  %v611_v39 = vld [vmem:[#allocation5 + $0xa18] sm:$0xff] }
  0xf9   : > { %v1695_v46 = vpack.c.bf16 %v501_v41, %v489_v40  ;;  %v609_v37 = vld [vmem:[#allocation5 + $0xa08] sm:$0xff]  ;;  %v623_v40 = vld [vmem:[#allocation5 + $0xa78] sm:$0xff] }
  0xfa   : > { %1674 = vmatpush1.bf16.msra.mxu0 %v1673_v47  ;;  %v488_v47 = vld [vmem:[#allocation5 + $0x640] sm:$0xff] }
  0xfb   : > { %1738 = vmatpush1.bf16.msra.mxu1 %v1737_v48  ;;  %1676 = vmatprep.subr.bf16.mxu0 %v1675_v49  ;;  %v500_v48 = vld [vmem:[#allocation5 + $0x6a0] sm:$0xff]  ;;  %v490_v49 = vld [vmem:[#allocation5 + $0x650] sm:$0xff] }
  0xfc   : > { %1740 = vmatprep.subr.bf16.mxu1 %v1739_v53  ;;  %v525_v53 = vld [vmem:[#allocation5 + $0x768] sm:$0xff]  ;;  %v1697_v56 = vpack.c.bf16 %v500_v48, %v488_v47  ;;  %v1761_v57 = vpack.c.bf16 %v502_v51, %v490_v49  ;;  %v1779_v47 = vpack.c.bf16 %v623_v40, %v611_v39  ;;  %v622_v48 = vld [vmem:[#allocation5 + $0xa70] sm:$0xff]  ;;  %v635_v51 = vld [vmem:[#allocation5 + $0xad8] sm:$0xff] }
  0xfd   : > { %v1699_v58 = vpack.c.bf16 %v525_v53, %v513_v52  ;;  %v633_v49 = vld [vmem:[#allocation5 + $0xac8] sm:$0xff]  ;;  %v647_v52 = vld [vmem:[#allocation5 + $0xb38] sm:$0xff] }
  0xfe   : > { %1678 = vmatpush1.bf16.msra.mxu0 %v1677_v59  ;;  %v512_v59 = vld [vmem:[#allocation5 + $0x700] sm:$0xff] }
  0xff   : > { %1742 = vmatpush1.bf16.msra.mxu1 %v1741_v16  ;;  %1680 = vmatprep.subr.bf16.mxu0 %v1679_v60  ;;  %v524_v16 = vld [vmem:[#allocation5 + $0x760] sm:$0xff]  ;;  %v514_v60 = vld [vmem:[#allocation5 + $0x710] sm:$0xff] }
 0x100   : > { %1744 = vmatprep.subr.bf16.mxu1 %v1743_v0  ;;  %v549_v0 = vld [vmem:[#allocation5 + $0x828] sm:$0xff]  ;;  %v1701_v3 = vpack.c.bf16 %v524_v16, %v512_v59  ;;  %v1765_v4 = vpack.c.bf16 %v526_v62, %v514_v60  ;;  %v1783_v59 = vpack.c.bf16 %v647_v52, %v635_v51  ;;  %v646_v16 = vld [vmem:[#allocation5 + $0xb30] sm:$0xff]  ;;  %v659_v62 = vld [vmem:[#allocation5 + $0xb98] sm:$0xff] }
 0x101   : > { %v1703_v5 = vpack.c.bf16 %v549_v0, %v537_v63  ;;  %v657_v60 = vld [vmem:[#allocation5 + $0xb88] sm:$0xff]  ;;  %v671_v63 = vld [vmem:[#allocation5 + $0xbf8] sm:$0xff] }
 0x102   : > { %1682 = vmatpush1.bf16.msra.mxu0 %v1681_v6  ;;  %v536_v6 = vld [vmem:[#allocation5 + $0x7c0] sm:$0xff] }
 0x103   : > { %1746 = vmatpush1.bf16.msra.mxu1 %v1745_v7  ;;  %1684 = vmatprep.subr.bf16.mxu0 %v1683_v8  ;;  %v548_v7 = vld [vmem:[#allocation5 + $0x820] sm:$0xff]  ;;  %v538_v8 = vld [vmem:[#allocation5 + $0x7d0] sm:$0xff] }
 0x104   : > { %1748 = vmatprep.subr.bf16.mxu1 %v1747_v12  ;;  %v573_v12 = vld [vmem:[#allocation5 + $0x8e8] sm:$0xff]  ;;  %v1705_v17 = vpack.c.bf16 %v548_v7, %v536_v6  ;;  %v1769_v18 = vpack.c.bf16 %v550_v10, %v538_v8  ;;  %v658_v6 = vld [vmem:[#allocation5 + $0xb90] sm:$0xff]  ;;  %v676_v10 = vlaneseq }
 0x105   : > { %v1707_v19 = vpack.c.bf16 %v573_v12, %v561_v11  ;;  %v670_v7 = vld [vmem:[#allocation5 + $0xbf0] sm:$0xff] }
 0x106   : > { %1686 = vmatpush1.bf16.msra.mxu0 %v1685_v20  ;;  %v560_v20 = vld [vmem:[#allocation5 + $0x880] sm:$0xff]  ;;  %v2321_v11 = vshrl.u32 %v676_v10, 7 }
 0x107   : > { %1750 = vmatpush1.bf16.msra.mxu1 %v1749_v21  ;;  %1688 = vmatprep.subr.bf16.mxu0 %v1687_v22  ;;  %v572_v21 = vld [vmem:[#allocation5 + $0x8e0] sm:$0xff]  ;;  %v562_v22 = vld [vmem:[#allocation5 + $0x890] sm:$0xff] }
 0x108   : > { %1752 = vmatprep.subr.bf16.mxu1 %v1751_v26  ;;  %v597_v26 = vld [vmem:[#allocation5 + $0x9a8] sm:$0xff]  ;;  %v1709_v29 = vpack.c.bf16 %v572_v21, %v560_v20  ;;  %v1773_v30 = vpack.c.bf16 %v574_v24, %v562_v22  ;;  %v678_v12 = vsub.s32 0, %v2321_v11  ;;  %v686_v14 = vsub.s32 2, %v2321_v11 }
 0x109   : > { %v1711_v31 = vpack.c.bf16 %v597_v26, %v585_v25 }
 0x10a   : > { %1690 = vmatpush1.bf16.msra.mxu0 %v1689_v32  ;;  %v584_v32 = vld [vmem:[#allocation5 + $0x940] sm:$0xff] }
 0x10b   : > { %1754 = vmatpush1.bf16.msra.mxu1 %v1753_v33  ;;  %1692 = vmatprep.subr.bf16.mxu0 %v1691_v34  ;;  %v596_v33 = vld [vmem:[#allocation5 + $0x9a0] sm:$0xff]  ;;  %v586_v34 = vld [vmem:[#allocation5 + $0x950] sm:$0xff] }
 0x10c   : > { %1756 = vmatprep.subr.bf16.mxu1 %v1755_v38  ;;  %v621_v38 = vld [vmem:[#allocation5 + $0xa68] sm:$0xff]  ;;  %v1713_v41 = vpack.c.bf16 %v596_v33, %v584_v32  ;;  %v1777_v42 = vpack.c.bf16 %v598_v36, %v586_v34 }
 0x10d   : > { %v1715_v43 = vpack.c.bf16 %v621_v38, %v609_v37 }
 0x10e   : > { %1694 = vmatpush1.bf16.msra.mxu0 %v1693_v44  ;;  %v608_v44 = vld [vmem:[#allocation5 + $0xa00] sm:$0xff] }
 0x10f   : > { %1758 = vmatpush1.bf16.msra.mxu1 %v1757_v45  ;;  %1696 = vmatprep.subr.bf16.mxu0 %v1695_v46  ;;  %v620_v45 = vld [vmem:[#allocation5 + $0xa60] sm:$0xff]  ;;  %v610_v46 = vld [vmem:[#allocation5 + $0xa10] sm:$0xff] }
 0x110   : > { %1760 = vmatprep.subr.bf16.mxu1 %v1759_v50  ;;  %v645_v50 = vld [vmem:[#allocation5 + $0xb28] sm:$0xff]  ;;  %v1717_v53 = vpack.c.bf16 %v620_v45, %v608_v44  ;;  %v1781_v54 = vpack.c.bf16 %v622_v48, %v610_v46 }
 0x111   : > { %v1719_v55 = vpack.c.bf16 %v645_v50, %v633_v49 }
 0x112   : > { %1698 = vmatpush1.bf16.msra.mxu0 %v1697_v56  ;;  %v632_v56 = vld [vmem:[#allocation5 + $0xac0] sm:$0xff] }
 0x113   : > { %1762 = vmatpush1.bf16.msra.mxu1 %v1761_v57  ;;  %1700 = vmatprep.subr.bf16.mxu0 %v1699_v58  ;;  %v644_v57 = vld [vmem:[#allocation5 + $0xb20] sm:$0xff]  ;;  %v634_v58 = vld [vmem:[#allocation5 + $0xad0] sm:$0xff] }
 0x114   : > { %1764 = vmatprep.subr.bf16.mxu1 %v1763_v61  ;;  %v669_v61 = vld [vmem:[#allocation5 + $0xbe8] sm:$0xff]  ;;  %v1721_v0 = vpack.c.bf16 %v644_v57, %v632_v56  ;;  %v1785_v1 = vpack.c.bf16 %v646_v16, %v634_v58 }
 0x115   : > { %v1723_v2 = vpack.c.bf16 %v669_v61, %v657_v60 }
 0x116   : > { %1702 = vmatpush1.bf16.msra.mxu0 %v1701_v3  ;;  %v656_v3 = vld [vmem:[#allocation5 + $0xb80] sm:$0xff] }
 0x117   : > { %1766 = vmatpush1.bf16.msra.mxu1 %v1765_v4  ;;  %1704 = vmatprep.subr.bf16.mxu0 %v1703_v5  ;;  %v668_v4 = vld [vmem:[#allocation5 + $0xbe0] sm:$0xff]  ;;  %v1787_v5 = vpack.c.bf16 %v671_v63, %v659_v62 }
 0x118   : > { %1768 = vmatprep.subr.bf16.mxu1 %v1767_v9  ;;  %v1725_v8 = vpack.c.bf16 %v668_v4, %v656_v3  ;;  %v1789_v9 = vpack.c.bf16 %v670_v7, %v658_v6 }
 0x11a   : > { %1706 = vmatpush1.bf16.msra.mxu0 %v1705_v17  ;;  %v682_v17 = vsub.s32 1, %v2321_v11 }
 0x11b   : > { %1770 = vmatpush1.bf16.msra.mxu1 %v1769_v18  ;;  %1708 = vmatprep.subr.bf16.mxu0 %v1707_v19  ;;  %v690_v18 = vsub.s32 3, %v2321_v11  ;;  %v679_v19 = vrot.slane %v672_v13, %v678_v12 }
 0x11c   : > { %1772 = vmatprep.subr.bf16.mxu1 %v1771_v23  ;;  %v683_v20 = vrot.slane %v672_v13, %v682_v17 }
 0x11d   : > { %v691_v21 = vrot.slane %v672_v13, %v690_v18 }
 0x11e   : > { %1710 = vmatpush1.bf16.msra.mxu0 %v1709_v29 }
 0x11f   : > { %1774 = vmatpush1.bf16.msra.mxu1 %v1773_v30  ;;  %1712 = vmatprep.subr.bf16.mxu0 %v1711_v31 }
 0x120   : > { %1776 = vmatprep.subr.bf16.mxu1 %v1775_v35 }
 0x122   : > { %1714 = vmatpush1.bf16.msra.mxu0 %v1713_v41 }
 0x123   : > { %1778 = vmatpush1.bf16.msra.mxu1 %v1777_v42  ;;  %1716 = vmatprep.subr.bf16.mxu0 %v1715_v43 }
 0x124   : > { %1780 = vmatprep.subr.bf16.mxu1 %v1779_v47 }
 0x126   : > { %1718 = vmatpush1.bf16.msra.mxu0 %v1717_v53 }
 0x127   : > { %1782 = vmatpush1.bf16.msra.mxu1 %v1781_v54  ;;  %1720 = vmatprep.subr.bf16.mxu0 %v1719_v55 }
 0x128   : > { %1784 = vmatprep.subr.bf16.mxu1 %v1783_v59 }
 0x12a   : > { %1722 = vmatpush1.bf16.msra.mxu0 %v1721_v0 }
 0x12b   : > { %1786 = vmatpush1.bf16.msra.mxu1 %v1785_v1  ;;  %1724 = vmatprep.subr.bf16.mxu0 %v1723_v2 }
 0x12c   : > { %1788 = vmatprep.subr.bf16.mxu1 %v1787_v5 }
 0x12e   : > { %1726 = vmatpush1.bf16.msra.mxu0 %v1725_v8 }
 0x12f   : > { %1790 = vmatpush1.bf16.msra.mxu1 %v1789_v9 }
 0x131   : > { %1085 = vmatmul.mubr.f32.vlgmr.msra.gmra.mrb[4].mxu0 %v2309_v15 }
 0x132   : > { %1156 = vmatmul.mubr.f32.vlgmr.msra.gmra.mrb[4].mxu1 %v2309_v15  ;;  %v687_v15 = vrot.slane %v672_v13, %v686_v14 }
 0x184   : > { %v802_v22 = vpop.f32.mrb[0].mxu0 }
 0x185   : > { %v803_v23 = vadd.f32 %v802_v22, %v679_v19  ;;  %v873_v24 = vpop.f32.mrb[0].mxu1  ;;  %v804_v25 = vpop.f32.mrb[1].mxu0 }
 0x186   : > { %v874_v26 = vadd.f32 %v873_v24, %v687_v15  ;;  %v805_v27 = vadd.f32 %v804_v25, %v683_v20  ;;  %v875_v28 = vpop.f32.mrb[1].mxu1 }
 0x187   : > { %1162 = vst [vmem:[%s271_s26] sm:$0xff] %v803_v23  ;;  %v876_v29 = vadd.f32 %v875_v28, %v691_v21 }
 0x188   : > { %1164 = vst [vmem:[%s271_s26 + $0x10] sm:$0xff] %v874_v26  ;;  %1163 = vst [vmem:[%s271_s26 + $0x8] sm:$0xff] %v805_v27 }
 0x189   : > { %1165 = vst [vmem:[%s271_s26 + $0x18] sm:$0xff] %v876_v29 }
 0x18a   : > { %1969 = shalt.err (!%p1966_p7)
}
 0x18b   : > { %s1970_s14 = scalar_lea.hbm %s2346_s13, 512  ;;  %s1974_s26 = scalar_lea.hbm %s2465_s3, 2048 }
 0x18c   : > { %p1971_p9 = scmp.ne.s32.totalorder %s2346_s13, %s1970_s14  ;;  %p1975_p0 = scmp.lt.u32.totalorder %s2346_s13, %s2465_s3 }
 0x18d   : > { %p1976_p10 = scmp.lt.u32.totalorder %s1974_s26, %s1970_s14  ;;  %p1978_p1 = scmp.lt.u32.totalorder %s1970_s14, %s2346_s13 }
 0x18e   : > { %p1972_p12 = pnand %p1971_p9, %p2240_p4 }
 0x18f   : > { %p1977_p11 = por %p1976_p10, %p1975_p0 }
 0x190   : > { %p1973_p5 = pneg %p1972_p12 }
 0x191   : > { %p1979_p2 = por %p1978_p1, %p1977_p11 }
 0x193   : > { %p1980_p6 = pnand %p1979_p2, %p1973_p5 }
 0x195   : > { %1983 = shalt.err (!%p1980_p6)
}
 0x196   : > { %1801 = dma.vmem_to_hbm [thread:$0]  (%p2240_p4), %s1200_s8, 512, %s2346_s13, %s1175_s30   ;;  %v694_v30 = vsub.s32 4, %v2321_v11  ;;  %v702_v31 = vsub.s32 6, %v2321_v11  ;;  %v698_v32 = vsub.s32 5, %v2321_v11  ;;  %v706_v33 = vsub.s32 7, %v2321_v11 }
 0x197   : > { %s1179_s9 = sand.u32 1, %s2147_s22   ;;  %s278_s11 = scalar_lea.vmem [#allocation9], %s2328_s24 }
 0x198   : > { %v695_v34 = vrot.slane %v672_v13, %v694_v30  ;;  %v703_v35 = vrot.slane %v672_v13, %v702_v31  ;;  %v699_v36 = vrot.slane %v672_v13, %v698_v32  ;;  %v707_v37 = vrot.slane %v672_v13, %v706_v33  ;;  %s1213_s29 = sshll.u32 %s278_s11, 4  ;;  %s2376_s30 = scalar_lea.hbm %s2466_s4, %s2340_s10  ;;  %s2378_s29 = int_to_ptr.vmem [resolvable:$true] %s1213_s29 }
 0x199   : > { %s2380_s22 = scalar_lea.sflag [#allocation10], %s1179_s9  ;;  %s1984_s16 = scalar_lea.vmem %s2378_s29, 512 }
 0x19a   : > { %p1985_p8 = scmp.ne.s32.totalorder %s2378_s29, %s1984_s16  ;;  %s2094_s14 = smov [#allocation9]  }
 0x19b   : > { %s1988_s7 = sshll.u32 %s2094_s14, 4  ;;  %s1989_s7 = int_to_ptr.vmem [resolvable:$false] %s1988_s7 }
 0x19c   : > { %p1986_p13 = pnand %p1985_p8, %p2240_p4  ;;  %s1990_s6 = scalar_lea.vmem %s1989_s7, 1024 }
 0x19d   : > { %p1991_p7 = scmp.lt.s32.totalorder %s2378_s29, %s1989_s7  ;;  %p1992_p9 = scmp.lt.s32.totalorder %s1990_s6, %s1984_s16 }
 0x19e   : > { %p1987_p3 = pneg %p1986_p13 }
 0x19f   : > { %p1993_p12 = por %p1992_p9, %p1991_p7 }
 0x1a1   : > { %p1994_p5 = pnand %p1993_p12, %p1987_p3 }
 0x1c4   : > { %v944_v38 = vpop.f32.mrb[2].mxu0 }
 0x1c5   : > { %v945_v39 = vadd.f32 %v944_v38, %v695_v34  ;;  %v1015_v40 = vpop.f32.mrb[2].mxu1  ;;  %v946_v41 = vpop.f32.mrb[3].mxu0 }
 0x1c6   : > { %v1016_v42 = vadd.f32 %v1015_v40, %v703_v35  ;;  %v947_v43 = vadd.f32 %v946_v41, %v699_v36  ;;  %v1017_v44 = vpop.f32.mrb[3].mxu1 }
 0x1c7   : > { %1166 = vst [vmem:[%s278_s11] sm:$0xff] %v945_v39  ;;  %v1018_v45 = vadd.f32 %v1017_v44, %v707_v37 }
 0x1c8   : > { %1168 = vst [vmem:[%s278_s11 + $0x10] sm:$0xff] %v1016_v42  ;;  %1167 = vst [vmem:[%s278_s11 + $0x8] sm:$0xff] %v947_v43 }
 0x1c9   : > { %1169 = vst [vmem:[%s278_s11 + $0x18] sm:$0xff] %v1018_v45 }
 0x1ca   : > { %1997 = shalt.err (!%p1994_p5)
}
 0x1cb   : > { %s1998_s26 = scalar_lea.hbm %s2376_s30, 512  ;;  %s2002_s9 = scalar_lea.hbm %s2466_s4, 2048 }
 0x1cc   : > { %p1999_p0 = scmp.ne.s32.totalorder %s2376_s30, %s1998_s26  ;;  %p2003_p1 = scmp.lt.u32.totalorder %s2376_s30, %s2466_s4 }
 0x1cd   : > { %p2004_p2 = scmp.lt.u32.totalorder %s2002_s9, %s1998_s26  ;;  %p2006_p8 = scmp.lt.u32.totalorder %s1998_s26, %s2376_s30 }
 0x1ce   : > { %p2000_p10 = pnand %p1999_p0, %p2240_p4 }
 0x1cf   : > { %p2005_p6 = por %p2004_p2, %p2003_p1 }
 0x1d0   : > { %p2001_p11 = pneg %p2000_p10 }
 0x1d1   : > { %p2007_p13 = por %p2006_p8, %p2005_p6 }
 0x1d3   : > { %p2008_p3 = pnand %p2007_p13, %p2001_p11 }
 0x1d5   : > { %2011 = shalt.err (!%p2008_p3)
}
 0x1d6   : > { %1802 = dma.vmem_to_hbm [thread:$0]  (%p2240_p4), %s2378_s29, 512, %s2376_s30, %s2380_s22   ;;  %v673_v46 = vld [vmem:[#allocation7 + $0x8] sm:$0xf] }
 0x1d7   : > { %v711_v47 = vrot.slane %v673_v46, %v678_v12  ;;  %v719_v48 = vrot.slane %v673_v46, %v686_v14  ;;  %v715_v49 = vrot.slane %v673_v46, %v682_v17  ;;  %v723_v50 = vrot.slane %v673_v46, %v690_v18  ;;  %s285_s8 = scalar_lea.vmem [#allocation11], %s2328_s24  ;;  %s2419_s14 = scalar_lea.hbm %s2467_s5, %s2340_s10 }
 0x1d8   : > { %s1227_s16 = sshll.u32 %s285_s8, 4  ;;  %s2095_s7 = smov [#allocation11]   ;;  %s2413_s16 = int_to_ptr.vmem [resolvable:$true] %s1227_s16 }
 0x1d9   : > { %s2012_s24 = scalar_lea.vmem %s2413_s16, 512  ;;  %s2016_s6 = sshll.u32 %s2095_s7, 4  ;;  %s2017_s6 = int_to_ptr.vmem [resolvable:$false] %s2016_s6 }
 0x1da   : > { %p2013_p7 = scmp.ne.s32.totalorder %s2413_s16, %s2012_s24  ;;  %s2018_s26 = scalar_lea.vmem %s2017_s6, 1024 }
 0x1db   : > { %p2019_p5 = scmp.lt.s32.totalorder %s2413_s16, %s2017_s6  ;;  %p2020_p0 = scmp.lt.s32.totalorder %s2018_s26, %s2012_s24 }
 0x1dc   : > { %p2014_p9 = pnand %p2013_p7, %p2240_p4 }
 0x1dd   : > { %p2021_p10 = por %p2020_p0, %p2019_p5 }
 0x1de   : > { %p2015_p12 = pneg %p2014_p9 }
 0x1e0   : > { %p2022_p11 = pnand %p2021_p10, %p2015_p12 }
 0x204   : > { %v1086_v51 = vpop.f32.mrb[4].mxu0 }
 0x205   : > { %v1087_v52 = vadd.f32 %v1086_v51, %v711_v47  ;;  %v1157_v53 = vpop.f32.mrb[4].mxu1  ;;  %v1088_v54 = vpop.f32.mrb[5].mxu0 }
 0x206   : > { %v1158_v55 = vadd.f32 %v1157_v53, %v719_v48  ;;  %v1089_v56 = vadd.f32 %v1088_v54, %v715_v49  ;;  %v1159_v57 = vpop.f32.mrb[5].mxu1 }
 0x207   : > { %1170 = vst [vmem:[%s285_s8] sm:$0xff] %v1087_v52  ;;  %v1160_v58 = vadd.f32 %v1159_v57, %v723_v50 }
 0x208   : > { %1172 = vst [vmem:[%s285_s8 + $0x10] sm:$0xff] %v1158_v55  ;;  %1171 = vst [vmem:[%s285_s8 + $0x8] sm:$0xff] %v1089_v56 }
 0x209   : > { %1173 = vst [vmem:[%s285_s8 + $0x18] sm:$0xff] %v1160_v58 }
 0x20a   : > { %2025 = shalt.err (!%p2022_p11)
}
 0x20b   : > { %s2026_s10 = scalar_lea.hbm %s2419_s14, 512  ;;  %s2030_s9 = scalar_lea.hbm %s2467_s5, 2048 }
 0x20c   : > { %p2027_p1 = scmp.ne.s32.totalorder %s2419_s14, %s2026_s10  ;;  %p2031_p8 = scmp.lt.u32.totalorder %s2419_s14, %s2467_s5 }
 0x20d   : > { %p2032_p13 = scmp.lt.u32.totalorder %s2030_s9, %s2026_s10  ;;  %p2034_p7 = scmp.lt.u32.totalorder %s2026_s10, %s2419_s14 }
 0x20e   : > { %p2028_p2 = pnand %p2027_p1, %p2240_p4 }
 0x20f   : > { %p2033_p3 = por %p2032_p13, %p2031_p8 }
 0x210   : > { %p2029_p6 = pneg %p2028_p2 }
 0x211   : > { %p2035_p9 = por %p2034_p7, %p2033_p3 }
 0x213   : > { %p2036_p12 = pnand %p2035_p9, %p2029_p6 }
 0x215   : > { %2039 = shalt.err (!%p2036_p12)
}
 0x216   : > { %1803 = dma.vmem_to_hbm [thread:$0]  (%p2240_p4), %s2413_s16, 512, %s2419_s14, %s2380_s22  }
 0x217 PF: > { %p1833_p5 = scmp.ge.s32.totalorder %s2086_s21, 2  ;;  %s1239_s8 = sand.u32 1, %s2074_s18  }
 0x218   : > { %p2482_p0 = scmp.ne.s32.totalorder %s2472_s25, 0  ;;  %s1240_s29 = scalar_lea.sflag [#allocation4], %s1239_s8 }
 0x21a   : > { %p1819_p10 = pnand %p1833_p5, %p2482_p0 }
 0x21c   : > { %2065 = dma.done.wait (!%p1819_p10), %s1240_s29, 512  }
 0x21d   : > { %2067 = vsyncadd (!%p1819_p10), %s1240_s29, 4294966784  ;;  %s1248_s30 = sand.u32 1, %s1377_s23  }
 0x21e   : > { %s1249_s24 = scalar_lea.sflag [#allocation10], %s1248_s30 }
 0x21f   : > { %2069 = dma.done.wait (!%p1819_p10), %s1249_s24, 1024  }
 0x220   : > { %2071 = vsyncadd (!%p1819_p10), %s1249_s24, 4294966272  ;;  %p23_p4 = scmp.ge.s32.totalorder %s2230_s15, 6   ;;  %s2483_s18 = smov %s2078_s19 }
 0x221   : > { %s2484_s19 = smov %s2082_s20  ;;  %s2485_s20 = smov %s2246_s27 }
 0x222   : > { %s2486_s21 = smov %s2230_s15  ;;  %25 = sbr.rel (!%p23_p4) target bundleno = 8 (0x8), region = 117 }
 0x229   :  { %1263 = vsyncpa [#allocation3], 1 }
 0x22a   :  { %1265 = vsyncpa [#allocation3 + $0x1], 1 }
 0x22b   :  { %1266 = vsyncpa [#allocation6], 1 }
 0x22c   :  { %1267 = vsyncpa [#allocation4], 1 }
 0x22d   :  { %1269 = vsyncpa [#allocation4 + $0x1], 1 }
 0x22e   :  { %1270 = vsyncpa [#allocation10], 1 }
 0x22f   :  { %1272 = vsyncpa [#allocation10 + $0x1], 1 }

</bundles_post_ra>
